<compile_context>
chip_gen: v6e
topology: v6e:2x2x1
jax: 0.10.0
libtpu: 0.0.40
codegen_flags: <defaults>
</compile_context>

<pallas_src>
import functools

import jax
import jax.numpy as jnp
from jax.experimental import pallas as pl
from jax.experimental.pallas import tpu as pltpu


def _round_up(x, m):
    return (x + m - 1) // m * m


def _pad_channels(c):
    # Lane-dense (multiple of 128) only when it does not blow up small channel counts;
    # otherwise a bf16-sublane-friendly multiple of 16.
    return _round_up(c, 128) if c >= 128 else _round_up(c, 16)


def _vmem_limit_bytes():
    # Generation-aware VMEM cap: ~48 MiB on v7x (64 MiB physical), 96 MiB on v5e/v6e.
    try:
        cap = int(pltpu.get_tpu_info().vmem_capacity_bytes)
    except Exception:
        cap = 64 * 1024 * 1024
    lim = min(cap * 3 // 4, 96 * 1024 * 1024)
    return max(lim, 32 * 1024 * 1024)


# ----------------------------------------------------------------------------
# Pallas kernel: direct conv with the kw taps folded into the contraction,
# fused with BN bias, optional residual add and ReLU.
#   x_ref   : (1, P, Hh, Wh, Cin)   bf16  phase-decomposed, spatially padded input
#   w_ref   : (k, k*Cin, Ct)        bf16  BN-scale-folded weights (K axis: kw-major, Cin-minor)
#   b_ref   : (1, Ct)               f32   BN-folded bias
#   res_ref : (1, TH, Wo, Ct)       bf16  optional residual
#   o_ref   : (1, TH, Wo, Ct)
#   plan    : tuple over kh of (row_off, ((phase, col_off), ... one per kw))
#   grid    : (N, n_ct, n_mt)  -- m-tile index is grid axis 2.
# ----------------------------------------------------------------------------
def _conv_bn_kernel(x_ref, w_ref, b_ref, *rest, plan, th, wo,
                    apply_relu, has_residual):
    if has_residual:
        res_ref, o_ref = rest
    else:
        (o_ref,) = rest
    ct = o_ref.shape[-1]
    r0 = pl.program_id(2) * th                       # first output row of this tile

    # Hoisted column shifts: load the needed row span once per phase, shift along W
    # once per distinct (phase, col_off), concatenate once per distinct column plan.
    max_ro = max(ro for ro, _ in plan)
    span = th + max_ro
    phase_rows = {}
    shifted = {}
    for ro, cols in plan:
        for (ph, co) in cols:
            if ph not in phase_rows:
                phase_rows[ph] = x_ref[0, ph, pl.ds(r0, span), :, :]     # (span, Wh, Cin)
            if (ph, co) not in shifted:
                shifted[(ph, co)] = phase_rows[ph][:, co:co + wo, :]     # (span, Wo, Cin)
    cat_cache = {}
    for _, cols in plan:
        if cols not in cat_cache:
            parts = [shifted[(ph, co)] for (ph, co) in cols]
            cat_cache[cols] = (parts[0] if len(parts) == 1
                               else jnp.concatenate(parts, axis=-1))     # (span, Wo, k*Cin)

    acc = jnp.zeros((th * wo, ct), jnp.float32)
    for kh, (ro, cols) in enumerate(plan):
        lhs = cat_cache[cols][ro:ro + th].reshape(th * wo, -1)           # (TH*Wo, k*Cin) bf16
        acc = acc + jnp.dot(lhs, w_ref[kh],
                            preferred_element_type=jnp.float32)

    y = acc + b_ref[...]                              # BN bias (scale folded into W)
    if has_residual:
        y = y + res_ref[0].reshape(th * wo, ct).astype(jnp.float32)
    if apply_relu:
        y = jnp.maximum(y, 0.0)
    o_ref[0] = y.reshape(th, wo, ct).astype(o_ref.dtype)


# ----------------------------------------------------------------------------
# Wrapper glue (pure data movement, no im2col expansion)
# ----------------------------------------------------------------------------
def _prep_conv_input(x_nhwc, ksize, stride, pad, Ho, Wo):
    """Pad + (for stride 2) phase-decompose so the kernel only needs unit-stride
    windows.  Returns xps: (N, P, Hh, Wh, Cin) and the per-row-tap plan."""
    if pad:
        x_nhwc = jnp.pad(x_nhwc, ((0, 0), (pad, pad), (pad, pad), (0, 0)))
    if stride == 1:
        xps = x_nhwc[:, None]                                   # (N, 1, Hp, Wp, C)
        plan = tuple((kh, tuple((0, kw) for kw in range(ksize)))
                     for kh in range(ksize))
        return xps, plan
    assert stride == 2, "only stride 1 or 2 supported"
    off = (ksize - 1) // 2
    Hh, Wh = Ho + off, Wo + off
    phases = []
    for a in range(2):
        for b in range(2):
            ph = x_nhwc[:, a::2, b::2, :][:, :Hh, :Wh, :]
            ph = jnp.pad(ph, ((0, 0), (0, Hh - ph.shape[1]),
                              (0, Wh - ph.shape[2]), (0, 0)))
            phases.append(ph)
    xps = jnp.stack(phases, axis=1)                             # (N, 4, Hh, Wh, C)
    plan = tuple((kh // 2, tuple((2 * (kh % 2) + (kw % 2), kw // 2)
                                 for kw in range(ksize)))
                 for kh in range(ksize))
    return xps, plan


def conv_bn(x_nhwc, w_oihw, conv_bias, gamma, beta, mean, var, *,
            stride, pad, relu, residual=None,
            out_dtype=jnp.bfloat16, eps=1e-5):
    """Conv (k x k, stride, pad) + eval-mode BN (+ residual) (+ ReLU) via one Pallas kernel.
    Returns (out (N, Ho, Wo, Cp), Ho, Wo, Cp) with Cp = _pad_channels(Cout)."""
    N, H, W, Cin = x_nhwc.shape
    Cout, Cin_w, kh_, kw_ = w_oihw.shape
    assert Cin_w == Cin and kh_ == kw_
    k = kh_
    Ho = (H + 2 * pad - k) // stride + 1
    Wo = (W + 2 * pad - k) // stride + 1
    Cp = _pad_channels(Cout)

    # Fold eval-mode BN into the conv: scale into the weights, shift into a bias.
    scale = gamma / jnp.sqrt(var + eps)
    b0 = conv_bias if conv_bias is not None else jnp.zeros((Cout,), jnp.float32)
    bias = beta + (b0 - mean) * scale
    # (O, I, kh, kw) -> (kh, kw, I, O) -> (kh, kw*I, O): kw folded into the contraction K.
    wmat = jnp.transpose(w_oihw, (2, 3, 1, 0)).reshape(k, k * Cin, Cout)
    wmat = wmat * scale[None, None, :]
    wmat = jnp.pad(wmat, ((0, 0), (0, 0), (0, Cp - Cout))).astype(jnp.bfloat16)
    bias = jnp.pad(bias, (0, Cp - Cout)).reshape(1, Cp).astype(jnp.float32)

    xps, plan = _prep_conv_input(x_nhwc.astype(jnp.bfloat16), k, stride, pad, Ho, Wo)
    P, Hh, Wh = xps.shape[1], xps.shape[2], xps.shape[3]

    # Output-channel tile: full padded width when small, else 512/256/128 divisor
    # (keeps the 256-wide v6e/v7x MXU output filled; 128 only as last resort).
    if Cp <= 512:
        tile_c = Cp
    elif Cp % 512 == 0:
        tile_c = 512
    elif Cp % 256 == 0:
        tile_c = 256
    else:
        tile_c = 128
    n_ct = Cp // tile_c

    # Output-row tile: keep the f32 accumulator (TH*Wo*tile_c elements) small enough
    # to live in vregs (<= ~128 KiB) instead of spilling.
    th = 1
    for d in range(1, Ho + 1):
        if Ho % d == 0 and d * Wo * tile_c <= 32768:
            th = d
    n_mt = Ho // th

    grid = (N, n_ct, n_mt)                  # m-tile innermost: weights stay resident
    in_specs = [
        pl.BlockSpec((1, P, Hh, Wh, Cin), lambda n, c, m: (n, 0, 0, 0, 0)),
        pl.BlockSpec((k, k * Cin, tile_c), lambda n, c, m: (0, 0, c)),
        pl.BlockSpec((1, tile_c), lambda n, c, m: (0, c)),
    ]
    args = [xps, wmat, bias]
    if residual is not None:
        assert residual.shape == (N, Ho, Wo, Cp)
        in_specs.append(pl.BlockSpec((1, th, Wo, tile_c), lambda n, c, m: (n, m, 0, c)))
        args.append(residual.astype(jnp.bfloat16))

    kernel = functools.partial(_conv_bn_kernel, plan=plan, th=th, wo=Wo,
                               apply_relu=relu, has_residual=residual is not None)

    out_bytes = N * Ho * Wo * Cp * jnp.dtype(out_dtype).itemsize
    bytes_accessed = int(xps.size) * 2 + int(wmat.size) * 2 + int(bias.size) * 4 + out_bytes
    if residual is not None:
        bytes_accessed += N * Ho * Wo * Cp * 2
    cost = pl.CostEstimate(flops=2 * N * Ho * Wo * (k * k * Cin) * Cp,
                           transcendentals=0, bytes_accessed=bytes_accessed)

    out = pl.pallas_call(
        kernel,
        out_shape=jax.ShapeDtypeStruct((N, Ho, Wo, Cp), out_dtype),
        grid=grid,
        in_specs=in_specs,
        out_specs=pl.BlockSpec((1, th, Wo, tile_c), lambda n, c, m: (n, m, 0, c)),
        compiler_params=pltpu.CompilerParams(
            dimension_semantics=("parallel", "parallel", "parallel"),
            vmem_limit_bytes=_vmem_limit_bytes()),
        cost_estimate=cost,
    )(*args)
    return out, Ho, Wo, Cp


# ----------------------------------------------------------------------------
# ResidualBlock forward (Pallas-backed)
# ----------------------------------------------------------------------------
def residual_block_forward(x_nchw, params, stride):
    x = jnp.transpose(x_nchw, (0, 2, 3, 1))                  # NCHW -> NHWC
    N, H, W, Cin = x.shape
    Cout = params["conv1_w"].shape[0]
    Cp = _pad_channels(Cout)

    # conv1 (3x3, stride) + BN1 + ReLU -> bf16, channels padded to Cp
    y1, Ho, Wo, Cp1 = conv_bn(
        x, params["conv1_w"], params["conv1_b"],
        params["bn1_gamma"], params["bn1_beta"], params["bn1_mean"], params["bn1_var"],
        stride=stride, pad=1, relu=True, out_dtype=jnp.bfloat16)
    assert Cp1 == Cp

    # shortcut: 1x1/stride conv (no bias) + BN, or identity
    if stride != 1 or Cin != Cout:
        xs = x[:, ::stride, ::stride, :]                     # 1x1/stride == decimate
        sc, _, _, _ = conv_bn(
            xs, params["convs_w"], None,
            params["bns_gamma"], params["bns_beta"], params["bns_mean"], params["bns_var"],
            stride=1, pad=0, relu=False, out_dtype=jnp.bfloat16)
    else:
        sc = jnp.pad(x, ((0, 0), (0, 0), (0, 0), (0, Cp - Cin))).astype(jnp.bfloat16)

    # conv2 (3x3, s=1) + BN2 + residual add + ReLU, all fused in one kernel.
    # conv2's input is the Cp-channel-padded y1: pad its input-channel axis with zero
    # rows (padded channels therefore cannot leak into the result).
    w2 = jnp.pad(params["conv2_w"], ((0, 0), (0, Cp - Cout), (0, 0), (0, 0)))
    out, _, _, _ = conv_bn(
        y1, w2, params["conv2_b"],
        params["bn2_gamma"], params["bn2_beta"], params["bn2_mean"], params["bn2_var"],
        stride=1, pad=1, relu=True, residual=sc, out_dtype=jnp.bfloat16)

    # slice padded channels, cast to f32 and go back to NCHW (single fused XLA pass)
    out = out[..., :Cout].astype(jnp.float32)
    return jnp.transpose(out, (0, 3, 1, 2))                  # NHWC -> NCHW


# ----------------------------------------------------------------------------
# Pure-JAX reference (no Pallas) for correctness check
# ----------------------------------------------------------------------------
def reference_forward(x, params, stride):
    def conv(x, w, b, s, pad):
        y = jax.lax.conv_general_dilated(
            x, w, (s, s), [(pad, pad), (pad, pad)],
            dimension_numbers=("NCHW", "OIHW", "NCHW"))
        if b is not None:
            y = y + b.reshape(1, -1, 1, 1)
        return y

    def bn(x, g, be, m, v, eps=1e-5):
        r = lambda a: a.reshape(1, -1, 1, 1)
        return (x - r(m)) / jnp.sqrt(r(v) + eps) * r(g) + r(be)

    out = conv(x, params["conv1_w"], params["conv1_b"], stride, 1)
    out = jnp.maximum(bn(out, params["bn1_gamma"], params["bn1_beta"],
                         params["bn1_mean"], params["bn1_var"]), 0.0)
    out = conv(out, params["conv2_w"], params["conv2_b"], 1, 1)
    out = bn(out, params["bn2_gamma"], params["bn2_beta"],
             params["bn2_mean"], params["bn2_var"])
    Cin, Cout = params["conv1_w"].shape[1], params["conv1_w"].shape[0]
    if stride != 1 or Cin != Cout:
        sc = conv(x, params["convs_w"], None, stride, 0)
        sc = bn(sc, params["bns_gamma"], params["bns_beta"],
                params["bns_mean"], params["bns_var"])
    else:
        sc = x
    return jnp.maximum(out + sc, 0.0)


# ----------------------------------------------------------------------------
# Deterministic parameter construction + run
# ----------------------------------------------------------------------------
def make_params(key, in_channel, out_channel, stride):
    ks = jax.random.split(key, 12)
    p = {
        "conv1_w": 0.1 * jax.random.normal(ks[0], (out_channel, in_channel, 3, 3), jnp.float32),
        "conv1_b": 0.1 * jax.random.normal(ks[1], (out_channel,), jnp.float32),
        "bn1_gamma": 1.0 + 0.1 * jax.random.normal(ks[2], (out_channel,), jnp.float32),
        "bn1_beta": 0.1 * jax.random.normal(ks[3], (out_channel,), jnp.float32),
        "bn1_mean": 0.1 * jax.random.normal(ks[4], (out_channel,), jnp.float32),
        "bn1_var": 1.0 + 0.1 * jnp.abs(jax.random.normal(ks[5], (out_channel,), jnp.float32)),
        "conv2_w": 0.1 * jax.random.normal(ks[6], (out_channel, out_channel, 3, 3), jnp.float32),
        "conv2_b": 0.1 * jax.random.normal(ks[7], (out_channel,), jnp.float32),
        "bn2_gamma": 1.0 + 0.1 * jax.random.normal(ks[8], (out_channel,), jnp.float32),
        "bn2_beta": 0.1 * jax.random.normal(ks[9], (out_channel,), jnp.float32),
        "bn2_mean": 0.1 * jax.random.normal(ks[10], (out_channel,), jnp.float32),
        "bn2_var": 1.0 + 0.1 * jnp.abs(jax.random.normal(ks[11], (out_channel,), jnp.float32)),
    }
    if stride != 1 or in_channel != out_channel:
        ks2 = jax.random.split(jax.random.fold_in(key, 123), 5)
        p.update({
            "convs_w": 0.1 * jax.random.normal(ks2[0], (out_channel, in_channel, 1, 1), jnp.float32),
            "bns_gamma": 1.0 + 0.1 * jax.random.normal(ks2[1], (out_channel,), jnp.float32),
            "bns_beta": 0.1 * jax.random.normal(ks2[2], (out_channel,), jnp.float32),
            "bns_mean": 0.1 * jax.random.normal(ks2[3], (out_channel,), jnp.float32),
            "bns_var": 1.0 + 0.1 * jnp.abs(jax.random.normal(ks2[4], (out_channel,), jnp.float32)),
        })
    return p


if __name__ == "__main__":
    key = jax.random.PRNGKey(0)
    N, Cin, Cout, H, W, stride = 2, 4, 8, 16, 16, 2

    kx, kp = jax.random.split(key)
    x = jax.random.normal(kx, (N, Cin, H, W), jnp.float32)
    params = make_params(kp, Cin, Cout, stride)

    fwd = jax.jit(residual_block_forward, static_argnums=2)
    out = jax.block_until_ready(fwd(x, params, stride))

    ref = jax.block_until_ready(reference_forward(x, params, stride))

    assert out.shape == ref.shape == (N, Cout, H // stride, W // stride)
    # bf16 MXU inputs / bf16 intermediates with f32 accumulation -> loosened tolerance
    assert jnp.allclose(out, ref, atol=6e-2, rtol=6e-2), float(jnp.max(jnp.abs(out - ref)))
    print("KERNEL_OK")
</pallas_src>

<mosaic_0001>
module attributes {stable_mosaic.version = 11 : i64} {
  func.func @_conv_bn_kernel(%arg0: i32, %arg1: i32, %arg2: i32, %arg3: memref<1x1x8x8x4xbf16, #tpu.memory_space<vmem>>, %arg4: memref<1x4x16xbf16, #tpu.memory_space<vmem>>, %arg5: memref<1x16xf32, #tpu.memory_space<vmem>>, %arg6: memref<1x8x8x16xbf16, #tpu.memory_space<vmem>>) attributes {dimension_semantics = [#tpu.dimension_semantics<parallel>, #tpu.dimension_semantics<parallel>, #tpu.dimension_semantics<parallel>], iteration_bounds = array<i64: 2, 1, 1>, scalar_prefetch = 0 : i64, scratch_operands = 0 : i64, tpu.core_type = #tpu.core_type<tc>, window_params = [{transform_indices = @transform_0, window_bounds = array<i64: 1, 1, 8, 8, 4>}, {transform_indices = @transform_1, window_bounds = array<i64: 1, 4, 16>}, {transform_indices = @transform_2, window_bounds = array<i64: 1, 16>}, {transform_indices = @transform_3, window_bounds = array<i64: 1, 8, 8, 16>}]} {
    %c8_i32 = arith.constant 8 : i32
    %0 = arith.muli %arg2, %c8_i32 : i32
    %c0 = arith.constant 0 : index
    %c0_0 = arith.constant 0 : index
    %1 = arith.index_cast %0 : i32 to index
    %c0_1 = arith.constant 0 : index
    %c0_2 = arith.constant 0 : index
    %2 = vector.load %arg3[%c0, %c0_0, %1, %c0_1, %c0_2] : memref<1x1x8x8x4xbf16, #tpu.memory_space<vmem>>, vector<1x1x8x8x4xbf16>
    %3 = vector.shape_cast %2 : vector<1x1x8x8x4xbf16> to vector<8x8x4xbf16>
    %cst = arith.constant 0.000000e+00 : f32
    %4 = vector.broadcast %cst : f32 to vector<64x16xf32>
    %5 = vector.shape_cast %3 : vector<8x8x4xbf16> to vector<64x4xbf16>
    %c0_3 = arith.constant 0 : index
    %c0_4 = arith.constant 0 : index
    %c0_5 = arith.constant 0 : index
    %6 = vector.load %arg4[%c0_3, %c0_4, %c0_5] : memref<1x4x16xbf16, #tpu.memory_space<vmem>>, vector<1x4x16xbf16>
    %7 = vector.shape_cast %6 : vector<1x4x16xbf16> to vector<4x16xbf16>
    %cst_6 = arith.constant dense<0.000000e+00> : vector<64x16xf32>
    %8 = tpu.matmul %5, %7, %cst_6 {dimension_numbers = #tpu.dot_dimension_numbers<[1], [0], [0], [1], [0, 0, 1, 1], [], []>} : vector<64x4xbf16>, vector<4x16xbf16>, vector<64x16xf32> -> vector<64x16xf32>
    %9 = arith.addf %4, %8 : vector<64x16xf32>
    %c0_7 = arith.constant 0 : index
    %c0_8 = arith.constant 0 : index
    %10 = vector.load %arg5[%c0_7, %c0_8] : memref<1x16xf32, #tpu.memory_space<vmem>>, vector<1x16xf32>
    %11 = vector.broadcast %10 : vector<1x16xf32> to vector<64x16xf32>
    %12 = arith.addf %9, %11 : vector<64x16xf32>
    %13 = vector.shape_cast %12 : vector<64x16xf32> to vector<8x8x16xf32>
    %14 = arith.truncf %13 : vector<8x8x16xf32> to vector<8x8x16xbf16>
    %c0_9 = arith.constant 0 : index
    %c0_10 = arith.constant 0 : index
    %c0_11 = arith.constant 0 : index
    %c0_12 = arith.constant 0 : index
    %15 = vector.load %arg6[%c0_9, %c0_10, %c0_11, %c0_12] : memref<1x8x8x16xbf16, #tpu.memory_space<vmem>>, vector<1x8x8x16xbf16>
    %16 = vector.shape_cast %15 : vector<1x8x8x16xbf16> to vector<8x8x16xbf16>
    %17 = vector.shape_cast %14 : vector<8x8x16xbf16> to vector<1x8x8x16xbf16>
    tpu.vector_store %arg6[%c0_9, %c0_10, %c0_11, %c0_12], %17 {strides = array<i32>} : memref<1x8x8x16xbf16, #tpu.memory_space<vmem>>, vector<1x8x8x16xbf16>,
    return
  }
  func.func @transform_0(%arg0: i32, %arg1: i32, %arg2: i32) -> (i32, i32, i32, i32, i32) {
    %c0_i32 = arith.constant 0 : i32
    %c0_i32_0 = arith.constant 0 : i32
    %c0_i32_1 = arith.constant 0 : i32
    %c0_i32_2 = arith.constant 0 : i32
    %c0_i32_3 = arith.constant 0 : i32
    return %arg0, %c0_i32, %c0_i32_0, %c0_i32_1, %c0_i32_2 : i32, i32, i32, i32, i32
  }
  func.func @transform_1(%arg0: i32, %arg1: i32, %arg2: i32) -> (i32, i32, i32) {
    %c0_i32 = arith.constant 0 : i32
    %c0_i32_0 = arith.constant 0 : i32
    %c0_i32_1 = arith.constant 0 : i32
    return %c0_i32, %c0_i32_0, %arg1 : i32, i32, i32
  }
  func.func @transform_2(%arg0: i32, %arg1: i32, %arg2: i32) -> (i32, i32) {
    %c0_i32 = arith.constant 0 : i32
    %c0_i32_0 = arith.constant 0 : i32
    return %c0_i32, %arg1 : i32, i32
  }
  func.func @transform_3(%arg0: i32, %arg1: i32, %arg2: i32) -> (i32, i32, i32, i32) {
    %c0_i32 = arith.constant 0 : i32
    %c0_i32_0 = arith.constant 0 : i32
    return %arg0, %arg2, %c0_i32, %arg1 : i32, i32, i32, i32
  }
}

module attributes {stable_mosaic.version = 11 : i64} {
  func.func @_conv_bn_kernel(%arg0: i32, %arg1: i32, %arg2: i32, %arg3: memref<1x4x9x9x4xbf16, #tpu.memory_space<vmem>>, %arg4: memref<3x12x16xbf16, #tpu.memory_space<vmem>>, %arg5: memref<1x16xf32, #tpu.memory_space<vmem>>, %arg6: memref<1x8x8x16xbf16, #tpu.memory_space<vmem>>) attributes {dimension_semantics = [#tpu.dimension_semantics<parallel>, #tpu.dimension_semantics<parallel>, #tpu.dimension_semantics<parallel>], iteration_bounds = array<i64: 2, 1, 1>, scalar_prefetch = 0 : i64, scratch_operands = 0 : i64, tpu.core_type = #tpu.core_type<tc>, window_params = [{transform_indices = @transform_0, window_bounds = array<i64: 1, 4, 9, 9, 4>}, {transform_indices = @transform_1, window_bounds = array<i64: 3, 12, 16>}, {transform_indices = @transform_2, window_bounds = array<i64: 1, 16>}, {transform_indices = @transform_3, window_bounds = array<i64: 1, 8, 8, 16>}]} {
    %c8_i32 = arith.constant 8 : i32
    %0 = arith.muli %arg2, %c8_i32 : i32
    %c0 = arith.constant 0 : index
    %c0_0 = arith.constant 0 : index
    %1 = arith.index_cast %0 : i32 to index
    %c0_1 = arith.constant 0 : index
    %c0_2 = arith.constant 0 : index
    %2 = vector.load %arg3[%c0, %c0_0, %1, %c0_1, %c0_2] : memref<1x4x9x9x4xbf16, #tpu.memory_space<vmem>>, vector<1x1x9x9x4xbf16>
    %3 = vector.shape_cast %2 : vector<1x1x9x9x4xbf16> to vector<9x9x4xbf16>
    %4 = vector.extract_strided_slice %3 {offsets = [0, 0, 0], sizes = [9, 8, 4], strides = [1, 1, 1]} : vector<9x9x4xbf16> to vector<9x8x4xbf16>
    %c0_3 = arith.constant 0 : index
    %c1 = arith.constant 1 : index
    %5 = arith.index_cast %0 : i32 to index
    %c0_4 = arith.constant 0 : index
    %c0_5 = arith.constant 0 : index
    %6 = vector.load %arg3[%c0_3, %c1, %5, %c0_4, %c0_5] : memref<1x4x9x9x4xbf16, #tpu.memory_space<vmem>>, vector<1x1x9x9x4xbf16>
    %7 = vector.shape_cast %6 : vector<1x1x9x9x4xbf16> to vector<9x9x4xbf16>
    %8 = vector.extract_strided_slice %7 {offsets = [0, 0, 0], sizes = [9, 8, 4], strides = [1, 1, 1]} : vector<9x9x4xbf16> to vector<9x8x4xbf16>
    %9 = vector.extract_strided_slice %3 {offsets = [0, 1, 0], sizes = [9, 8, 4], strides = [1, 1, 1]} : vector<9x9x4xbf16> to vector<9x8x4xbf16>
    %c0_6 = arith.constant 0 : index
    %c2 = arith.constant 2 : index
    %10 = arith.index_cast %0 : i32 to index
    %c0_7 = arith.constant 0 : index
    %c0_8 = arith.constant 0 : index
    %11 = vector.load %arg3[%c0_6, %c2, %10, %c0_7, %c0_8] : memref<1x4x9x9x4xbf16, #tpu.memory_space<vmem>>, vector<1x1x9x9x4xbf16>
    %12 = vector.shape_cast %11 : vector<1x1x9x9x4xbf16> to vector<9x9x4xbf16>
    %13 = vector.extract_strided_slice %12 {offsets = [0, 0, 0], sizes = [9, 8, 4], strides = [1, 1, 1]} : vector<9x9x4xbf16> to vector<9x8x4xbf16>
    %c0_9 = arith.constant 0 : index
    %c3 = arith.constant 3 : index
    %14 = arith.index_cast %0 : i32 to index
    %c0_10 = arith.constant 0 : index
    %c0_11 = arith.constant 0 : index
    %15 = vector.load %arg3[%c0_9, %c3, %14, %c0_10, %c0_11] : memref<1x4x9x9x4xbf16, #tpu.memory_space<vmem>>, vector<1x1x9x9x4xbf16>
    %16 = vector.shape_cast %15 : vector<1x1x9x9x4xbf16> to vector<9x9x4xbf16>
    %17 = vector.extract_strided_slice %16 {offsets = [0, 0, 0], sizes = [9, 8, 4], strides = [1, 1, 1]} : vector<9x9x4xbf16> to vector<9x8x4xbf16>
    %18 = vector.extract_strided_slice %12 {offsets = [0, 1, 0], sizes = [9, 8, 4], strides = [1, 1, 1]} : vector<9x9x4xbf16> to vector<9x8x4xbf16>
    %19 = tpu.concatenate %4, %8, %9 in 2 : vector<9x8x4xbf16>, vector<9x8x4xbf16>, vector<9x8x4xbf16> -> vector<9x8x12xbf16>
    %20 = tpu.concatenate %13, %17, %18 in 2 : vector<9x8x4xbf16>, vector<9x8x4xbf16>, vector<9x8x4xbf16> -> vector<9x8x12xbf16>
    %cst = arith.constant 0.000000e+00 : f32
    %21 = vector.broadcast %cst : f32 to vector<64x16xf32>
    %22 = vector.extract_strided_slice %19 {offsets = [0, 0, 0], sizes = [8, 8, 12], strides = [1, 1, 1]} : vector<9x8x12xbf16> to vector<8x8x12xbf16>
    %23 = vector.shape_cast %22 : vector<8x8x12xbf16> to vector<64x12xbf16>
    %c0_12 = arith.constant 0 : index
    %c0_13 = arith.constant 0 : index
    %c0_14 = arith.constant 0 : index
    %24 = vector.load %arg4[%c0_12, %c0_13, %c0_14] : memref<3x12x16xbf16, #tpu.memory_space<vmem>>, vector<1x12x16xbf16>
    %25 = vector.shape_cast %24 : vector<1x12x16xbf16> to vector<12x16xbf16>
    %cst_15 = arith.constant dense<0.000000e+00> : vector<64x16xf32>
    %26 = tpu.matmul %23, %25, %cst_15 {dimension_numbers = #tpu.dot_dimension_numbers<[1], [0], [0], [1], [0, 0, 1, 1], [], []>} : vector<64x12xbf16>, vector<12x16xbf16>, vector<64x16xf32> -> vector<64x16xf32>
    %27 = arith.addf %21, %26 : vector<64x16xf32>
    %28 = vector.extract_strided_slice %20 {offsets = [0, 0, 0], sizes = [8, 8, 12], strides = [1, 1, 1]} : vector<9x8x12xbf16> to vector<8x8x12xbf16>
    %29 = vector.shape_cast %28 : vector<8x8x12xbf16> to vector<64x12xbf16>
    %c1_16 = arith.constant 1 : index
    %c0_17 = arith.constant 0 : index
    %c0_18 = arith.constant 0 : index
    %30 = vector.load %arg4[%c1_16, %c0_17, %c0_18] : memref<3x12x16xbf16, #tpu.memory_space<vmem>>, vector<1x12x16xbf16>
    %31 = vector.shape_cast %30 : vector<1x12x16xbf16> to vector<12x16xbf16>
    %cst_19 = arith.constant dense<0.000000e+00> : vector<64x16xf32>
    %32 = tpu.matmul %29, %31, %cst_19 {dimension_numbers = #tpu.dot_dimension_numbers<[1], [0], [0], [1], [0, 0, 1, 1], [], []>} : vector<64x12xbf16>, vector<12x16xbf16>, vector<64x16xf32> -> vector<64x16xf32>
    %33 = arith.addf %27, %32 : vector<64x16xf32>
    %34 = vector.extract_strided_slice %19 {offsets = [1, 0, 0], sizes = [8, 8, 12], strides = [1, 1, 1]} : vector<9x8x12xbf16> to vector<8x8x12xbf16>
    %35 = vector.shape_cast %34 : vector<8x8x12xbf16> to vector<64x12xbf16>
    %c2_20 = arith.constant 2 : index
    %c0_21 = arith.constant 0 : index
    %c0_22 = arith.constant 0 : index
    %36 = vector.load %arg4[%c2_20, %c0_21, %c0_22] : memref<3x12x16xbf16, #tpu.memory_space<vmem>>, vector<1x12x16xbf16>
    %37 = vector.shape_cast %36 : vector<1x12x16xbf16> to vector<12x16xbf16>
    %cst_23 = arith.constant dense<0.000000e+00> : vector<64x16xf32>
    %38 = tpu.matmul %35, %37, %cst_23 {dimension_numbers = #tpu.dot_dimension_numbers<[1], [0], [0], [1], [0, 0, 1, 1], [], []>} : vector<64x12xbf16>, vector<12x16xbf16>, vector<64x16xf32> -> vector<64x16xf32>
    %39 = arith.addf %33, %38 : vector<64x16xf32>
    %c0_24 = arith.constant 0 : index
    %c0_25 = arith.constant 0 : index
    %40 = vector.load %arg5[%c0_24, %c0_25] : memref<1x16xf32, #tpu.memory_space<vmem>>, vector<1x16xf32>
    %41 = vector.broadcast %40 : vector<1x16xf32> to vector<64x16xf32>
    %42 = arith.addf %39, %41 : vector<64x16xf32>
    %cst_26 = arith.constant 0.000000e+00 : f32
    %43 = vector.broadcast %cst_26 : f32 to vector<64x16xf32>
    %44 = arith.maximumf %42, %43 : vector<64x16xf32>
    %45 = vector.shape_cast %44 : vector<64x16xf32> to vector<8x8x16xf32>
    %46 = arith.truncf %45 : vector<8x8x16xf32> to vector<8x8x16xbf16>
    %c0_27 = arith.constant 0 : index
    %c0_28 = arith.constant 0 : index
    %c0_29 = arith.constant 0 : index
    %c0_30 = arith.constant 0 : index
    %47 = vector.load %arg6[%c0_27, %c0_28, %c0_29, %c0_30] : memref<1x8x8x16xbf16, #tpu.memory_space<vmem>>, vector<1x8x8x16xbf16>
    %48 = vector.shape_cast %47 : vector<1x8x8x16xbf16> to vector<8x8x16xbf16>
    %49 = vector.shape_cast %46 : vector<8x8x16xbf16> to vector<1x8x8x16xbf16>
    tpu.vector_store %arg6[%c0_27, %c0_28, %c0_29, %c0_30], %49 {strides = array<i32>} : memref<1x8x8x16xbf16, #tpu.memory_space<vmem>>, vector<1x8x8x16xbf16>,
    return
  }
  func.func @transform_0(%arg0: i32, %arg1: i32, %arg2: i32) -> (i32, i32, i32, i32, i32) {
    %c0_i32 = arith.constant 0 : i32
    %c0_i32_0 = arith.constant 0 : i32
    %c0_i32_1 = arith.constant 0 : i32
    %c0_i32_2 = arith.constant 0 : i32
    %c0_i32_3 = arith.constant 0 : i32
    return %arg0, %c0_i32, %c0_i32_0, %c0_i32_1, %c0_i32_2 : i32, i32, i32, i32, i32
  }
  func.func @transform_1(%arg0: i32, %arg1: i32, %arg2: i32) -> (i32, i32, i32) {
    %c0_i32 = arith.constant 0 : i32
    %c0_i32_0 = arith.constant 0 : i32
    %c0_i32_1 = arith.constant 0 : i32
    return %c0_i32, %c0_i32_0, %arg1 : i32, i32, i32
  }
  func.func @transform_2(%arg0: i32, %arg1: i32, %arg2: i32) -> (i32, i32) {
    %c0_i32 = arith.constant 0 : i32
    %c0_i32_0 = arith.constant 0 : i32
    return %c0_i32, %arg1 : i32, i32
  }
  func.func @transform_3(%arg0: i32, %arg1: i32, %arg2: i32) -> (i32, i32, i32, i32) {
    %c0_i32 = arith.constant 0 : i32
    %c0_i32_0 = arith.constant 0 : i32
    return %arg0, %arg2, %c0_i32, %arg1 : i32, i32, i32, i32
  }
}

module attributes {stable_mosaic.version = 11 : i64} {
  func.func @_conv_bn_kernel(%arg0: i32, %arg1: i32, %arg2: i32, %arg3: memref<1x1x10x10x16xbf16, #tpu.memory_space<vmem>>, %arg4: memref<3x48x16xbf16, #tpu.memory_space<vmem>>, %arg5: memref<1x16xf32, #tpu.memory_space<vmem>>, %arg6: memref<1x8x8x16xbf16, #tpu.memory_space<vmem>>, %arg7: memref<1x8x8x16xbf16, #tpu.memory_space<vmem>>) attributes {dimension_semantics = [#tpu.dimension_semantics<parallel>, #tpu.dimension_semantics<parallel>, #tpu.dimension_semantics<parallel>], iteration_bounds = array<i64: 2, 1, 1>, scalar_prefetch = 0 : i64, scratch_operands = 0 : i64, tpu.core_type = #tpu.core_type<tc>, window_params = [{transform_indices = @transform_0, window_bounds = array<i64: 1, 1, 10, 10, 16>}, {transform_indices = @transform_1, window_bounds = array<i64: 3, 48, 16>}, {transform_indices = @transform_2, window_bounds = array<i64: 1, 16>}, {transform_indices = @transform_3, window_bounds = array<i64: 1, 8, 8, 16>}, {transform_indices = @transform_4, window_bounds = array<i64: 1, 8, 8, 16>}]} {
    %c8_i32 = arith.constant 8 : i32
    %0 = arith.muli %arg2, %c8_i32 : i32
    %c0 = arith.constant 0 : index
    %c0_0 = arith.constant 0 : index
    %1 = arith.index_cast %0 : i32 to index
    %c0_1 = arith.constant 0 : index
    %c0_2 = arith.constant 0 : index
    %2 = vector.load %arg3[%c0, %c0_0, %1, %c0_1, %c0_2] : memref<1x1x10x10x16xbf16, #tpu.memory_space<vmem>>, vector<1x1x10x10x16xbf16>
    %3 = vector.shape_cast %2 : vector<1x1x10x10x16xbf16> to vector<10x10x16xbf16>
    %4 = vector.extract_strided_slice %3 {offsets = [0, 0, 0], sizes = [10, 8, 16], strides = [1, 1, 1]} : vector<10x10x16xbf16> to vector<10x8x16xbf16>
    %5 = vector.extract_strided_slice %3 {offsets = [0, 1, 0], sizes = [10, 8, 16], strides = [1, 1, 1]} : vector<10x10x16xbf16> to vector<10x8x16xbf16>
    %6 = vector.extract_strided_slice %3 {offsets = [0, 2, 0], sizes = [10, 8, 16], strides = [1, 1, 1]} : vector<10x10x16xbf16> to vector<10x8x16xbf16>
    %7 = tpu.concatenate %4, %5, %6 in 2 : vector<10x8x16xbf16>, vector<10x8x16xbf16>, vector<10x8x16xbf16> -> vector<10x8x48xbf16>
    %cst = arith.constant 0.000000e+00 : f32
    %8 = vector.broadcast %cst : f32 to vector<64x16xf32>
    %9 = vector.extract_strided_slice %7 {offsets = [0, 0, 0], sizes = [8, 8, 48], strides = [1, 1, 1]} : vector<10x8x48xbf16> to vector<8x8x48xbf16>
    %10 = vector.shape_cast %9 : vector<8x8x48xbf16> to vector<64x48xbf16>
    %c0_3 = arith.constant 0 : index
    %c0_4 = arith.constant 0 : index
    %c0_5 = arith.constant 0 : index
    %11 = vector.load %arg4[%c0_3, %c0_4, %c0_5] : memref<3x48x16xbf16, #tpu.memory_space<vmem>>, vector<1x48x16xbf16>
    %12 = vector.shape_cast %11 : vector<1x48x16xbf16> to vector<48x16xbf16>
    %cst_6 = arith.constant dense<0.000000e+00> : vector<64x16xf32>
    %13 = tpu.matmul %10, %12, %cst_6 {dimension_numbers = #tpu.dot_dimension_numbers<[1], [0], [0], [1], [0, 0, 1, 1], [], []>} : vector<64x48xbf16>, vector<48x16xbf16>, vector<64x16xf32> -> vector<64x16xf32>
    %14 = arith.addf %8, %13 : vector<64x16xf32>
    %15 = vector.extract_strided_slice %7 {offsets = [1, 0, 0], sizes = [8, 8, 48], strides = [1, 1, 1]} : vector<10x8x48xbf16> to vector<8x8x48xbf16>
    %16 = vector.shape_cast %15 : vector<8x8x48xbf16> to vector<64x48xbf16>
    %c1 = arith.constant 1 : index
    %c0_7 = arith.constant 0 : index
    %c0_8 = arith.constant 0 : index
    %17 = vector.load %arg4[%c1, %c0_7, %c0_8] : memref<3x48x16xbf16, #tpu.memory_space<vmem>>, vector<1x48x16xbf16>
    %18 = vector.shape_cast %17 : vector<1x48x16xbf16> to vector<48x16xbf16>
    %cst_9 = arith.constant dense<0.000000e+00> : vector<64x16xf32>
    %19 = tpu.matmul %16, %18, %cst_9 {dimension_numbers = #tpu.dot_dimension_numbers<[1], [0], [0], [1], [0, 0, 1, 1], [], []>} : vector<64x48xbf16>, vector<48x16xbf16>, vector<64x16xf32> -> vector<64x16xf32>
    %20 = arith.addf %14, %19 : vector<64x16xf32>
    %21 = vector.extract_strided_slice %7 {offsets = [2, 0, 0], sizes = [8, 8, 48], strides = [1, 1, 1]} : vector<10x8x48xbf16> to vector<8x8x48xbf16>
    %22 = vector.shape_cast %21 : vector<8x8x48xbf16> to vector<64x48xbf16>
    %c2 = arith.constant 2 : index
    %c0_10 = arith.constant 0 : index
    %c0_11 = arith.constant 0 : index
    %23 = vector.load %arg4[%c2, %c0_10, %c0_11] : memref<3x48x16xbf16, #tpu.memory_space<vmem>>, vector<1x48x16xbf16>
    %24 = vector.shape_cast %23 : vector<1x48x16xbf16> to vector<48x16xbf16>
    %cst_12 = arith.constant dense<0.000000e+00> : vector<64x16xf32>
    %25 = tpu.matmul %22, %24, %cst_12 {dimension_numbers = #tpu.dot_dimension_numbers<[1], [0], [0], [1], [0, 0, 1, 1], [], []>} : vector<64x48xbf16>, vector<48x16xbf16>, vector<64x16xf32> -> vector<64x16xf32>
    %26 = arith.addf %20, %25 : vector<64x16xf32>
    %c0_13 = arith.constant 0 : index
    %c0_14 = arith.constant 0 : index
    %27 = vector.load %arg5[%c0_13, %c0_14] : memref<1x16xf32, #tpu.memory_space<vmem>>, vector<1x16xf32>
    %28 = vector.broadcast %27 : vector<1x16xf32> to vector<64x16xf32>
    %29 = arith.addf %26, %28 : vector<64x16xf32>
    %c0_15 = arith.constant 0 : index
    %c0_16 = arith.constant 0 : index
    %c0_17 = arith.constant 0 : index
    %c0_18 = arith.constant 0 : index
    %30 = vector.load %arg6[%c0_15, %c0_16, %c0_17, %c0_18] : memref<1x8x8x16xbf16, #tpu.memory_space<vmem>>, vector<1x8x8x16xbf16>
    %31 = vector.shape_cast %30 : vector<1x8x8x16xbf16> to vector<8x8x16xbf16>
    %32 = vector.shape_cast %31 : vector<8x8x16xbf16> to vector<64x16xbf16>
    %33 = arith.extf %32 : vector<64x16xbf16> to vector<64x16xf32>
    %34 = arith.addf %29, %33 : vector<64x16xf32>
    %cst_19 = arith.constant 0.000000e+00 : f32
    %35 = vector.broadcast %cst_19 : f32 to vector<64x16xf32>
    %36 = arith.maximumf %34, %35 : vector<64x16xf32>
    %37 = vector.shape_cast %36 : vector<64x16xf32> to vector<8x8x16xf32>
    %38 = arith.truncf %37 : vector<8x8x16xf32> to vector<8x8x16xbf16>
    %c0_20 = arith.constant 0 : index
    %c0_21 = arith.constant 0 : index
    %c0_22 = arith.constant 0 : index
    %c0_23 = arith.constant 0 : index
    %39 = vector.load %arg7[%c0_20, %c0_21, %c0_22, %c0_23] : memref<1x8x8x16xbf16, #tpu.memory_space<vmem>>, vector<1x8x8x16xbf16>
    %40 = vector.shape_cast %39 : vector<1x8x8x16xbf16> to vector<8x8x16xbf16>
    %41 = vector.shape_cast %38 : vector<8x8x16xbf16> to vector<1x8x8x16xbf16>
    tpu.vector_store %arg7[%c0_20, %c0_21, %c0_22, %c0_23], %41 {strides = array<i32>} : memref<1x8x8x16xbf16, #tpu.memory_space<vmem>>, vector<1x8x8x16xbf16>,
    return
  }
  func.func @transform_0(%arg0: i32, %arg1: i32, %arg2: i32) -> (i32, i32, i32, i32, i32) {
    %c0_i32 = arith.constant 0 : i32
    %c0_i32_0 = arith.constant 0 : i32
    %c0_i32_1 = arith.constant 0 : i32
    %c0_i32_2 = arith.constant 0 : i32
    %c0_i32_3 = arith.constant 0 : i32
    return %arg0, %c0_i32, %c0_i32_0, %c0_i32_1, %c0_i32_2 : i32, i32, i32, i32, i32
  }
  func.func @transform_1(%arg0: i32, %arg1: i32, %arg2: i32) -> (i32, i32, i32) {
    %c0_i32 = arith.constant 0 : i32
    %c0_i32_0 = arith.constant 0 : i32
    %c0_i32_1 = arith.constant 0 : i32
    return %c0_i32, %c0_i32_0, %arg1 : i32, i32, i32
  }
  func.func @transform_2(%arg0: i32, %arg1: i32, %arg2: i32) -> (i32, i32) {
    %c0_i32 = arith.constant 0 : i32
    %c0_i32_0 = arith.constant 0 : i32
    return %c0_i32, %arg1 : i32, i32
  }
  func.func @transform_3(%arg0: i32, %arg1: i32, %arg2: i32) -> (i32, i32, i32, i32) {
    %c0_i32 = arith.constant 0 : i32
    %c0_i32_0 = arith.constant 0 : i32
    return %arg0, %arg2, %c0_i32, %arg1 : i32, i32, i32, i32
  }
  func.func @transform_4(%arg0: i32, %arg1: i32, %arg2: i32) -> (i32, i32, i32, i32) {
    %c0_i32 = arith.constant 0 : i32
    %c0_i32_0 = arith.constant 0 : i32
    return %arg0, %arg2, %c0_i32, %arg1 : i32, i32, i32, i32
  }
}

</mosaic_0001>

<bundles_post_ra>
// kernel: residual_block_forward.4
= control target key start
LH: loop header
LB: loop body
LE: loop exit
PB: predicated region body
PF: predicated region fallthrough
CT: control target
= control target key end

     0   :  { %s617_s12 = smov 0   ;;  %s619_s13 = smov 0   ;;  %s664_s0 = inlined_call_operand.vmem [shape: bf16[2,1,8,8,4], index: 0, kind: input, shape index: {}]   ;;  %s665_s1 = inlined_call_operand.vmem [shape: bf16[1,4,16], index: 1, kind: input, shape index: {}]   ;;  %s666_s2 = inlined_call_operand.vmem [shape: f32[1,16], index: 2, kind: input, shape index: {}]   ;;  %s667_s3 = inlined_call_operand.vmem [shape: bf16[2,8,8,16], index: 3, kind: output, shape index: {}]  }
   0x1   :  { %s621_s14 = smov 0  }
   0x2 LB: > { %s32_s15 = sadd.s32 1, %s591_s13  ;;  %p508_p0 = scmp.ge.s32.totalorder %s595_s14, 1  ;;  %s595_s14 = sphi %s621_s14, %s13_s14   ;;  %s591_s13 = sphi %s619_s13, %s669_s13   ;;  %s587_s12 = sphi %s617_s12, %s668_s12  }
   0x3   : > { %p34_p1 = scmp.ge.s32.totalorder %s32_s15, 2  ;;  %p177_p2 = scmp.lt.s32.totalorder %s595_s14, 3 }
   0x5   : > { %s671_s15 = smov (%p34_p1, %s32_s15), 0  ;;  %p178_p3 = pnand %p508_p0, %p177_p2 }
   0x6   : > { %p215_p4 = scmp.lt.s32.totalorder (!%p178_p3), %s587_s12, 1 }
   0x7   : > { %181 = sbr.rel (%p178_p3) target bundleno = 221 (0xdd), region = 32 }
   0xc   : > { %v252_v0 = vld [vmem:[%s665_s1] sm:$0x3]  ;;  %vm293_vm0 = vcmask 1041408   ;;  %s673_s12 = smov (!%p215_p4, %s587_s12), 1  ;;  %vm280_vm1 = vcmask 31744   ;;  %vm370_vm2 = vcmask 125952  }
   0xd   : > { %543 = vmatprep.subr.msk.bf16.mxu0 %vm293_vm0, %v252_v0  ;;  %544 = vmatprep.subr.msk.bf16.mxu1 %vm293_vm0, %v252_v0  ;;  %v295_v1 = vsel %vm293_vm0, %v252_v0, 0  ;;  %s524_s18 = sshll.u32 %s673_s12, 5  ;;  %v513_v6 = vld [vmem:[%s666_s2] ss:$0 sm:$0xff] }
   0xe   : > { %532 = vmatpush3.bf16.msra.mxu0 %v295_v1  ;;  %542 = vmatpush3.bf16.msra.mxu1 %v295_v1  ;;  %s219_s21 = scalar_lea.vmem %s664_s0, %s524_s18  ;;  %s238_s26 = scalar_lea.vmem %s667_s3, %s524_s18 }
   0xf   : > { %v569_v2 = vld [vmem:[%s219_s21] sm:$0xff]   ;;  %v570_v3 = vld [vmem:[%s219_s21 + $0x10] sm:$0xff]   ;;  %v571_v4 = vld [vmem:[%s219_s21 + $0x8] sm:$0xff]  }
  0x10   : > { %533 = vmatprep.mubr.msk.bf16.mxu0 %vm280_vm1, %v569_v2  ;;  %537 = vmatprep.mubr.msk.bf16.mxu1 %vm280_vm1, %v570_v3  ;;  %v572_v5 = vld [vmem:[%s219_s21 + $0x18] sm:$0xff]  }
  0x11   : > { %534 = vmatmul.mubr.msk.bf16.vlgmr.msra.gmra.mxu0 %vm280_vm1, %v571_v4  ;;  %538 = vmatmul.mubr.msk.bf16.vlgmr.msra.gmra.mxu1 %vm280_vm1, %v572_v5 }
  0xd1   : > { %v535_v7 = vpop.f32.mrf.mxu0  ;;  %v539_v9 = vpop.f32.mrf.mxu1 }
  0xd2   : > { %v340_v8 = vadd.f32 %v535_v7, %v513_v6  ;;  %v356_v10 = vadd.f32 %v539_v9, %v513_v6 }
  0xd3   : > { %v331_v11 = vpop.f32.mrf.mxu0  ;;  %v347_v14 = vpop.f32.mrf.mxu1 }
  0xd4   : > { %v364_v12 = vpack.c.bf16 %v340_v8, %v340_v8  ;;  %v332_v13 = vadd.f32 %v513_v6, %v331_v11  ;;  %v368_v15 = vpack.c.bf16 %v356_v10, %v356_v10  ;;  %v348_v16 = vadd.f32 %v513_v6, %v347_v14 }
  0xd5   : > { %v536_v17 = vpop.f32.mrf.mxu0  ;;  %v540_v20 = vpop.f32.mrf.mxu1 }
  0xd6   : > { %373 = vst.msk [vmem:[%s238_s26 + $0x8] sm:$0xf] %vm370_vm2, %v364_v12  ;;  %v362_v18 = vpack.c.bf16 %v332_v13, %v332_v13  ;;  %v343_v19 = vadd.f32 %v536_v17, %v513_v6  ;;  %377 = vst.msk [vmem:[%s238_s26 + $0x18] sm:$0xf] %vm370_vm2, %v368_v15  ;;  %v366_v21 = vpack.c.bf16 %v348_v16, %v348_v16 }
  0xd7   : > { %v359_v22 = vadd.f32 %v540_v20, %v513_v6  ;;  %v334_v23 = vpop.f32.mrf.mxu0  ;;  %v350_v26 = vpop.f32.mrf.mxu1 }
  0xd8   : > { %371 = vst.msk [vmem:[%s238_s26] sm:$0xf] %vm370_vm2, %v362_v18  ;;  %v365_v24 = vpack.c.bf16 %v343_v19, %v343_v19  ;;  %v335_v25 = vadd.f32 %v513_v6, %v334_v23  ;;  %375 = vst.msk [vmem:[%s238_s26 + $0x10] sm:$0xf] %vm370_vm2, %v366_v21  ;;  %v351_v28 = vadd.f32 %v513_v6, %v350_v26 }
  0xd9   : > { %v369_v27 = vpack.c.bf16 %v359_v22, %v359_v22 }
  0xda   : > { %374 = vst.msk [vmem:[%s238_s26 + $0xc] sm:$0xf] %vm370_vm2, %v365_v24  ;;  %v363_v29 = vpack.c.bf16 %v335_v25, %v335_v25  ;;  %v367_v30 = vpack.c.bf16 %v351_v28, %v351_v28 }
  0xdb   : > { %378 = vst.msk [vmem:[%s238_s26 + $0x1c] sm:$0xf] %vm370_vm2, %v369_v27 }
  0xdc   : > { %372 = vst.msk [vmem:[%s238_s26 + $0x4] sm:$0xf] %vm370_vm2, %v363_v29  ;;  %376 = vst.msk [vmem:[%s238_s26 + $0x14] sm:$0xf] %vm370_vm2, %v367_v30 }
  0xdd PF: > { %s13_s14 = sadd.s32 1, %s595_s14   ;;  %s668_s12 = smov %s591_s13 }
  0xde   : > { %p10_p5 = scmp.ge.s32.totalorder %s13_s14, 4   ;;  %s669_s13 = smov %s671_s15 }
  0xe0   :  { %12 = sbr.rel (!%p10_p5) target bundleno = 2 (0x2), region = 69 }

// kernel: residual_block_forward.3
= control target key start
LH: loop header
LB: loop body
LE: loop exit
PB: predicated region body
PF: predicated region fallthrough
CT: control target
= control target key end

     0   :  { %s1482_s12 = smov 0   ;;  %s1484_s13 = smov 0   ;;  %s1763_s0 = inlined_call_operand.vmem [shape: bf16[2,4,9,9,4], index: 0, kind: input, shape index: {}]   ;;  %s1764_s1 = inlined_call_operand.vmem [shape: bf16[3,12,16], index: 1, kind: input, shape index: {}]   ;;  %s1765_s2 = inlined_call_operand.vmem [shape: f32[1,16], index: 2, kind: input, shape index: {}]   ;;  %s1766_s3 = inlined_call_operand.vmem [shape: bf16[2,8,8,16], index: 3, kind: output, shape index: {}]  }
   0x1   :  { %s1486_s14 = smov 0  }
   0x2 LB: > { %s32_s15 = sadd.s32 1, %s1454_s13  ;;  %p1215_p0 = scmp.ge.s32.totalorder %s1458_s14, 1  ;;  %s1458_s14 = sphi %s1486_s14, %s13_s14   ;;  %s1454_s13 = sphi %s1484_s13, %s1768_s13   ;;  %s1450_s12 = sphi %s1482_s12, %s1767_s12  }
   0x3   : > { %p34_p1 = scmp.ge.s32.totalorder %s32_s15, 2  ;;  %p177_p2 = scmp.lt.s32.totalorder %s1458_s14, 3 }
   0x5   : > { %s1770_s15 = smov (%p34_p1, %s32_s15), 0  ;;  %p178_p3 = pnand %p1215_p0, %p177_p2 }
   0x6   : > { %p215_p4 = scmp.lt.s32.totalorder (!%p178_p3), %s1450_s12, 1  ;;  %s1460_s20 = smov (!%p178_p3), 4  }
   0x7   : > { %181 = sbr.rel (%p178_p3) target bundleno = 408 (0x198), region = 32  ;;  %s1461_s21 = smov (!%p178_p3), 8  }
   0xc   : > { %s1772_s12 = smov (!%p215_p4, %s1450_s12), 1  ;;  %vm758_vm0 = vcmask 1045504   ;;  %vm476_vm1 = vcmask 31744   ;;  %vm504_vm2 = vcmask 64512   ;;  %vm745_vm3 = vcmask 97280  }
   0xd   : > { %s1372_s16 = smul.u32 288, %s1772_s12  ;;  %s1320_s30 = sshll.u32 %s1772_s12, 5  ;;  %vm1065_vm4 = vcmask 125952  }
   0xe   : > { %s1736_s6 = scalar_lea.vmem %s1766_s3, %s1320_s30 }
   0xf   : > { %s1506_s19 = scalar_lea.vmem %s1763_s0, %s1372_s16 }
  0x10   : > { %v1399_v0 = vld [vmem:[%s1506_s19 + $0x108] ss:$0 sps:$4 sm:$0xff]   ;;  %v1400_v1 = vld [vmem:[%s1506_s19 + $0xf8] ss:$0 sps:$4 sm:$0xff]   ;;  %v1401_v2 = vld [vmem:[%s1506_s19 + $0x110] ss:$0 sps:$4 sm:$0xff]  }
  0x11   : > { %559 = vrot.lane.b32.xlu1 %v1399_v0, %s1460_s20  ;;  %555 = vrot.lane.b32.xlu0 %v1400_v1, %s1460_s20  ;;  %v1402_v3 = vld [vmem:[%s1506_s19 + $0x100] ss:$0 sps:$4 sm:$0xff]   ;;  %v1516_v5 = vld [vmem:[%s1506_s19 + $0xb8] sm:$0xf] }
  0x12   : > { %v1403_v4 = vld [vmem:[%s1506_s19 + $0xe0] ss:$0 sps:$4 sm:$0xff]   ;;  %v1239_v6 = vld [vmem:[%s1506_s19 + $0xbc] sm:$0x1]  ;;  %v1520_v7 = vld [vmem:[%s1506_s19 + $0xb0] sm:$0xf] }
  0x13   : > { %v1283_v8 = vcombine.low %v1516_v5, %v1239_v6  ;;  %v1237_v9 = vld [vmem:[%s1506_s19 + $0xb4] sm:$0x1]  ;;  %v1525_v10 = vld [vmem:[%s1506_s19 + $0xc8] sm:$0xf]  ;;  %v1243_v11 = vld [vmem:[%s1506_s19 + $0xcc] sm:$0x1] }
  0x14   : > { %v1282_v12 = vcombine.low %v1520_v7, %v1237_v9  ;;  %v1285_v13 = vcombine.low %v1525_v10, %v1243_v11  ;;  %v1532_v14 = vld [vmem:[%s1506_s19 + $0xc0] sm:$0xf]  ;;  %v1241_v15 = vld [vmem:[%s1506_s19 + $0xc4] sm:$0x1]  ;;  %v1404_v16 = vld [vmem:[%s1506_s19 + $0xd8] ss:$0 sps:$4 sm:$0xff]  }
  0x15   : > { %561 = vrot.lane.b32.xlu1 %v1401_v2, %s1460_s20  ;;  %557 = vrot.lane.b32.xlu0 %v1402_v3, %s1460_s20  ;;  %v639_v17 = vshrl.u32 %v1283_v8, 16  ;;  %v641_v18 = vshll.u32 %v1283_v8, 16  ;;  %v1284_v19 = vcombine.low %v1532_v14, %v1241_v15  ;;  %v1539_v26 = vld [vmem:[%s1506_s19 + $0x98] sm:$0xf]  ;;  %v1231_v29 = vld [vmem:[%s1506_s19 + $0x9c] sm:$0x1] }
  0x16   : > { %v632_v20 = vshrl.u32 %v1282_v12, 16  ;;  %v634_v21 = vshll.u32 %v1282_v12, 16  ;;  %v655_v22 = vshll.u32 %v1285_v13, 16  ;;  %v653_v24 = vshrl.u32 %v1285_v13, 16  ;;  %v1544_v30 = vld [vmem:[%s1506_s19 + $0x90] sm:$0xf] }
  0x17   : > { %v643_v23 = vrot.slane %v641_v18, 1  ;;  %v648_v25 = vshll.u32 %v1284_v19, 16  ;;  %v646_v32 = vshrl.u32 %v1284_v19, 16  ;;  %v1279_v34 = vcombine.low %v1539_v26, %v1231_v29  ;;  %v1229_v35 = vld [vmem:[%s1506_s19 + $0x94] sm:$0x1] }
  0x18   : > { %v636_v27 = vrot.slane %v634_v21, 1  ;;  %v657_v28 = vrot.slane %v655_v22, 1  ;;  %v1550_v36 = vld [vmem:[%s1506_s19 + $0xa8] sm:$0xf]  ;;  %v1278_v38 = vcombine.low %v1544_v30, %v1229_v35  ;;  %v1235_v39 = vld [vmem:[%s1506_s19 + $0xac] sm:$0x1] }
  0x19   : > { %549 = vrot.lane.b32.xlu1 %v1403_v4, %s1460_s20  ;;  %547 = vrot.lane.b32.xlu0 %v1404_v16, %s1460_s20  ;;  %v644_v31 = vor.u32 %v643_v23, %v639_v17  ;;  %v650_v33 = vrot.slane %v648_v25, 1  ;;  %v1555_v40 = vld [vmem:[%s1506_s19 + $0xa0] sm:$0xf]  ;;  %v1233_v41 = vld [vmem:[%s1506_s19 + $0xa4] sm:$0x1]  ;;  %v613_v43 = vshll.u32 %v1279_v34, 16  ;;  %v1281_v44 = vcombine.low %v1550_v36, %v1235_v39 }
  0x1a   : > { %v637_v37 = vor.u32 %v636_v27, %v632_v20  ;;  %v658_v42 = vor.u32 %v657_v28, %v653_v24  ;;  %v1280_v45 = vcombine.low %v1555_v40, %v1233_v41  ;;  %v606_v47 = vshll.u32 %v1278_v38, 16  ;;  %v1409_v48 = vld [vmem:[%s1506_s19 + $0xf0] ss:$0 sps:$4 sm:$0xff]   ;;  %v1410_v53 = vld [vmem:[%s1506_s19 + $0xe8] ss:$0 sps:$4 sm:$0xff]  }
  0x1b   : > { %v651_v46 = vor.u32 %v650_v33, %v646_v32  ;;  %v611_v49 = vshrl.u32 %v1279_v34, 16  ;;  %v615_v50 = vrot.slane %v613_v43, 1  ;;  %v627_v51 = vshll.u32 %v1281_v44, 16  ;;  %v1569_v62 = vld [vmem:[%s1506_s19 + $0x8] sm:$0xf] }
  0x1c   : > { %v620_v52 = vshll.u32 %v1280_v45, 16  ;;  %v604_v54 = vshrl.u32 %v1278_v38, 16  ;;  %v608_v55 = vrot.slane %v606_v47, 1  ;;  %v625_v56 = vshrl.u32 %v1281_v44, 16  ;;  %v248_v63 = vld [vmem:[%s1506_s19 + $0xc] sm:$0x1] }
  0x1d   : > { %669 = vrot.lane.b32.xlu1 %v644_v31, %s1461_s21  ;;  %667 = vrot.lane.b32.xlu0 %v637_v37, %s1461_s21  ;;  %v616_v57 = vor.u32 %v615_v50, %v611_v49  ;;  %v629_v58 = vrot.slane %v627_v51, 1  ;;  %v618_v59 = vshrl.u32 %v1280_v45, 16  ;;  %v1573_v0 = vld [vmem:[%s1506_s19] sm:$0xf]  ;;  %v246_v1 = vld [vmem:[%s1506_s19 + $0x4] sm:$0x1]  ;;  %v1262_v3 = vcombine.low %v1569_v62, %v248_v63 }
  0x1e   : > { %v622_v60 = vrot.slane %v620_v52, 1  ;;  %v609_v61 = vor.u32 %v608_v55, %v604_v54  ;;  %v1261_v6 = vcombine.low %v1573_v0, %v246_v1  ;;  %v1581_v8 = vld [vmem:[%s1506_s19 + $0x18] sm:$0xf]  ;;  %v252_v9 = vld [vmem:[%s1506_s19 + $0x1c] sm:$0x1] }
  0x1f   : > { %v630_v2 = vor.u32 %v629_v58, %v625_v56  ;;  %v1585_v11 = vld [vmem:[%s1506_s19 + $0x10] sm:$0xf]  ;;  %v250_v12 = vld [vmem:[%s1506_s19 + $0x14] sm:$0x1]  ;;  %v1416_v15 = vld [vmem:[%s1506_s19 + $0x48] ss:$0 sps:$4 sm:$0xff]   ;;  %v1264_v17 = vcombine.low %v1581_v8, %v252_v9 }
  0x20   : > { %v623_v4 = vor.u32 %v622_v60, %v618_v59  ;;  %v1415_v13 = vld [vmem:[%s1506_s19 + $0x50] ss:$0 sps:$4 sm:$0xff]   ;;  %v405_v16 = vshll.u32 %v1262_v3, 16  ;;  %v1593_v18 = vld [vmem:[%s1506_s19 + $0x20] sm:$0xf]  ;;  %v398_v20 = vshll.u32 %v1261_v6, 16  ;;  %v1263_v21 = vcombine.low %v1585_v11, %v250_v12 }
  0x21   : > { %673 = vrot.lane.b32.xlu1 %v658_v42, %s1461_s21  ;;  %671 = vrot.lane.b32.xlu0 %v651_v46, %s1461_s21  ;;  %v1433_v19 = vld [vmem:[%s1764_s1 + $0x8] sm:$0x3f]   ;;  %v254_v22 = vld [vmem:[%s1506_s19 + $0x24] sm:$0x1]  ;;  %v403_v28 = vshrl.u32 %v1262_v3, 16  ;;  %v419_v31 = vshll.u32 %v1264_v17, 16 }
  0x22   : > { %v1434_v23 = vld [vmem:[%s1764_s1] sm:$0x3f]   ;;  %1369 = vmatprep.subr.msk.bf16.mxu1 %vm758_vm0, %v1433_v19  ;;  %v760_v24 = vsel %vm758_vm0, %v1433_v19, 0  ;;  %1368 = vmatprep.subr.msk.bf16.mxu0 %vm758_vm0, %v1433_v19  ;;  %v407_v29 = vrot.slane %v405_v16, 1  ;;  %v1265_v32 = vcombine.low %v1593_v18, %v254_v22  ;;  %v1418_v33 = vld [vmem:[%s1506_s19 + $0x58] ss:$0 sps:$4 sm:$0xff]  }
  0x23   : > { %1367 = vmatpush3.bf16.msra.mxu1 %v760_v24  ;;  %1337 = vmatpush3.bf16.msra.mxu0 %v760_v24  ;;  %v1608_v25 = vsel %vm758_vm0, %v1434_v23, 0  ;;  %v1417_v27 = vld [vmem:[%s1506_s19 + $0x60] ss:$0 sps:$4 sm:$0xff]   ;;  %v396_v34 = vshrl.u32 %v1261_v6, 16  ;;  %v400_v35 = vrot.slane %v398_v20, 1  ;;  %v412_v37 = vshll.u32 %v1263_v21, 16 }
  0x24   : > { %1370 = vmatprep.subr.msk.bf16.mxu1 %vm758_vm0, %v1434_v23  ;;  %v1435_v38 = vld [vmem:[%s1764_s1 + $0x10] sm:$0x3f]   ;;  %v417_v39 = vshrl.u32 %v1264_v17, 16  ;;  %v408_v41 = vor.u32 %v407_v29, %v403_v28  ;;  %v421_v42 = vrot.slane %v419_v31, 1  ;;  %v426_v43 = vshll.u32 %v1265_v32, 16 }
  0x25   : > { %553 = vrot.lane.b32.xlu1 %v1409_v48, %s1460_s20  ;;  %551 = vrot.lane.b32.xlu0 %v1410_v53, %s1460_s20  ;;  %v1622_v44 = vsel %vm758_vm0, %v1435_v38, 0  ;;  %v401_v45 = vor.u32 %v400_v35, %v396_v34  ;;  %v410_v46 = vshrl.u32 %v1263_v21, 16  ;;  %v414_v47 = vrot.slane %v412_v37, 1  ;;  %v1626_v48 = vld [vmem:[%s1506_s19 + $0x28] sm:$0xf] }
  0x26   : > { %1371 = vmatprep.subr.msk.bf16.mxu0 %vm758_vm0, %v1435_v38  ;;  %v256_v49 = vld [vmem:[%s1506_s19 + $0x2c] sm:$0x1]  ;;  %v422_v50 = vor.u32 %v421_v42, %v417_v39  ;;  %v424_v51 = vshrl.u32 %v1265_v32, 16  ;;  %v428_v52 = vrot.slane %v426_v43, 1  ;;  %v1633_v55 = vld [vmem:[%s1506_s19 + $0x38] sm:$0xf] }
  0x27   : > { %v1266_v53 = vcombine.low %v1626_v48, %v256_v49  ;;  %v415_v54 = vor.u32 %v414_v47, %v410_v46  ;;  %v260_v56 = vld [vmem:[%s1506_s19 + $0x3c] sm:$0x1]  ;;  %v258_v58 = vld [vmem:[%s1506_s19 + $0x34] sm:$0x1]  ;;  %v1424_v63 = vld [vmem:[%s1506_s19 + $0x68] ss:$0 sps:$4 sm:$0xff]  }
  0x28   : > { %v429_v59 = vor.u32 %v428_v52, %v424_v51  ;;  %v262_v3 = vld [vmem:[%s1506_s19 + $0x44] sm:$0x1]  ;;  %v1428_v22 = vld [vmem:[%s1506_s19 + $0x80] ss:$0 sps:$4 sm:$0xff]  }
  0x29   : > { %661 = vrot.lane.b32.xlu1 %v616_v57, %s1461_s21  ;;  %659 = vrot.lane.b32.xlu0 %v609_v61, %s1461_s21  ;;  %v1637_v57 = vld [vmem:[%s1506_s19 + $0x30] sm:$0xf]  ;;  %v433_v60 = vshll.u32 %v1266_v53, 16  ;;  %v1268_v61 = vcombine.low %v1633_v55, %v260_v56  ;;  %v431_v6 = vshrl.u32 %v1266_v53, 16 }
  0x2a   : > { %v1267_v1 = vcombine.low %v1637_v57, %v258_v58 }
  0x2b   : > { %v435_v9 = vrot.slane %v433_v60, 1  ;;  %v447_v12 = vshll.u32 %v1268_v61, 16  ;;  %v445_v19 = vshrl.u32 %v1268_v61, 16 }
  0x2c   : > { %v440_v16 = vshll.u32 %v1267_v1, 16  ;;  %v438_v23 = vshrl.u32 %v1267_v1, 16 }
  0x2d   : > { %665 = vrot.lane.b32.xlu1 %v630_v2, %s1461_s21  ;;  %663 = vrot.lane.b32.xlu0 %v623_v4, %s1461_s21  ;;  %v1646_v2 = vld [vmem:[%s1506_s19 + $0x40] sm:$0xf]  ;;  %v1425_v4 = vld [vmem:[%s1506_s19 + $0x78] ss:$0 sps:$4 sm:$0xff]   ;;  %v436_v17 = vor.u32 %v435_v9, %v431_v6  ;;  %v449_v20 = vrot.slane %v447_v12, 1 }
  0x2e   : > { %v442_v24 = vrot.slane %v440_v16, 1 }
  0x30   : > { %v443_v31 = vor.u32 %v442_v24, %v438_v23 }
  0x31   : > { %334 = vrot.lane.b32.xlu1 %v1415_v13, %s1460_s20  ;;  %332 = vrot.lane.b32.xlu0 %v1416_v15, %s1460_s20  ;;  %v1269_v13 = vcombine.low %v1646_v2, %v262_v3  ;;  %v1426_v15 = vld [vmem:[%s1506_s19 + $0x70] ss:$0 sps:$4 sm:$0xff]  }
  0x33   : > { %v454_v21 = vshll.u32 %v1269_v13, 16  ;;  %v452_v28 = vshrl.u32 %v1269_v13, 16 }
  0x35   : > { %338 = vrot.lane.b32.xlu1 %v1417_v27, %s1460_s20  ;;  %336 = vrot.lane.b32.xlu0 %v1418_v33, %s1460_s20  ;;  %v450_v27 = vor.u32 %v449_v20, %v445_v19  ;;  %v456_v29 = vrot.slane %v454_v21, 1  ;;  %v1431_v33 = vld [vmem:[%s1506_s19 + $0x88] ss:$0 sps:$4 sm:$0xff]  }
  0x37   : > { %v457_v32 = vor.u32 %v456_v29, %v452_v28 }
  0x39   : > { %460 = vrot.lane.b32.xlu1 %v408_v41, %s1461_s21  ;;  %458 = vrot.lane.b32.xlu0 %v401_v45, %s1461_s21 }
  0x3d   : > { %464 = vrot.lane.b32.xlu1 %v422_v50, %s1461_s21  ;;  %462 = vrot.lane.b32.xlu0 %v415_v54, %s1461_s21 }
  0x41   : > { %466 = vrot.lane.b32.xlu1 %v429_v59, %s1461_s21  ;;  %340 = vrot.lane.b32.xlu0 %v1424_v63, %s1460_s20 }
  0x45   : > { %344 = vrot.lane.b32.xlu1 %v1425_v4, %s1460_s20  ;;  %342 = vrot.lane.b32.xlu0 %v1426_v15, %s1460_s20 }
  0x49   : > { %468 = vrot.lane.b32.xlu1 %v436_v17, %s1461_s21  ;;  %346 = vrot.lane.b32.xlu0 %v1428_v22, %s1460_s20 }
  0x4d   : > { %472 = vrot.lane.b32.xlu1 %v450_v27, %s1461_s21  ;;  %470 = vrot.lane.b32.xlu0 %v443_v31, %s1461_s21 }
  0x51   : > { %474 = vrot.lane.b32.xlu1 %v457_v32, %s1461_s21  ;;  %348 = vrot.lane.b32.xlu0 %v1431_v33, %s1460_s20 }
  0x83   : > { %v560_v34 = vpop.permute.xlu1 %559  ;;  %v556_v35 = vpop.permute.xlu0 %555 }
  0x84   : > { %v689_v45 = vsel %vm476_vm1, %v1520_v7, %v556_v35  ;;  %v695_v53 = vsel %vm476_vm1, %v1532_v14, %v560_v34 }
  0x87   : > { %v562_v37 = vpop.permute.xlu1 %561  ;;  %v558_v38 = vpop.permute.xlu0 %557 }
  0x88   : > { %v692_v42 = vsel %vm476_vm1, %v1516_v5, %v558_v38  ;;  %v698_v51 = vsel %vm476_vm1, %v1525_v10, %v562_v37 }
  0x8b   : > { %v550_v39 = vpop.permute.xlu1 %549  ;;  %v548_v41 = vpop.permute.xlu0 %547 }
  0x8c   : > { %v680_v10 = vsel %vm476_vm1, %v1539_v26, %v550_v39  ;;  %v677_v14 = vsel %vm476_vm1, %v1544_v30, %v548_v41 }
  0x8f   : > { %v670_v43 = vpop.permute.xlu1 %669  ;;  %v668_v47 = vpop.permute.xlu0 %667 }
  0x90   : > { %v710_v46 = vsel %vm504_vm2, %v692_v42, %v670_v43  ;;  %v708_v49 = vsel %vm504_vm2, %v689_v45, %v668_v47 }
  0x91   : > { %v1290_v50 = vcombine.low %v708_v49, %v710_v46 }
  0x93   : > { %v674_v52 = vpop.permute.xlu1 %673  ;;  %1342 = vmatprep.mubr.msk.bf16.mxu1 %vm745_vm3, %v1290_v50  ;;  %v672_v54 = vpop.permute.xlu0 %671 }
  0x94   : > { %v714_v5 = vsel %vm504_vm2, %v698_v51, %v674_v52  ;;  %v712_v7 = vsel %vm504_vm2, %v695_v53, %v672_v54 }
  0x95   : > { %v1291_v56 = vcombine.low %v712_v7, %v714_v5 }
  0x97   : > { %v554_v58 = vpop.permute.xlu1 %553  ;;  %1343 = vmatmul.mubr.msk.bf16.vlgmr.msra.gmra.mxu1 %vm745_vm3, %v1291_v56  ;;  %v552_v59 = vpop.permute.xlu0 %551 }
  0x98   : > { %1347 = vmatpush3.bf16.msra.mxu1 %v1608_v25  ;;  %v686_v4 = vsel %vm476_vm1, %v1550_v36, %v554_v58  ;;  %v683_v25 = vsel %vm476_vm1, %v1555_v40, %v552_v59 }
  0x9b   : > { %v662_v60 = vpop.permute.xlu1 %661  ;;  %v660_v63 = vpop.permute.xlu0 %659 }
  0x9c   : > { %v702_v61 = vsel %vm504_vm2, %v680_v10, %v662_v60  ;;  %v700_v1 = vsel %vm504_vm2, %v677_v14, %v660_v63 }
  0x9d   : > { %v1288_v3 = vcombine.low %v700_v1, %v702_v61 }
  0x9f   : > { %v666_v6 = vpop.permute.xlu1 %665  ;;  %1338 = vmatprep.mubr.msk.bf16.mxu0 %vm745_vm3, %v1288_v3  ;;  %v664_v26 = vpop.permute.xlu0 %663 }
  0xa0   : > { %v706_v9 = vsel %vm504_vm2, %v686_v4, %v666_v6  ;;  %v704_v30 = vsel %vm504_vm2, %v683_v25, %v664_v26 }
  0xa1   : > { %v1289_v12 = vcombine.low %v704_v30, %v706_v9 }
  0xa3   : > { %v335_v13 = vpop.permute.xlu1 %334  ;;  %1339 = vmatmul.mubr.msk.bf16.vlgmr.msra.gmra.mxu0 %vm745_vm3, %v1289_v12  ;;  %v333_v15 = vpop.permute.xlu0 %332 }
  0xa4   : > { %1357 = vmatpush3.bf16.msra.mxu0 %v1622_v44  ;;  %v482_v17 = vsel %vm476_vm1, %v1569_v62, %v335_v13  ;;  %v479_v19 = vsel %vm476_vm1, %v1573_v0, %v333_v15 }
  0xa7   : > { %v339_v16 = vpop.permute.xlu1 %338  ;;  %v337_v36 = vpop.permute.xlu0 %336 }
  0xa8   : > { %v488_v24 = vsel %vm476_vm1, %v1581_v8, %v339_v16  ;;  %v485_v44 = vsel %vm476_vm1, %v1585_v11, %v337_v36 }
  0xab   : > { %v461_v40 = vpop.permute.xlu1 %460  ;;  %v459_v21 = vpop.permute.xlu0 %458 }
  0xac   : > { %v508_v20 = vsel %vm504_vm2, %v482_v17, %v461_v40  ;;  %v506_v22 = vsel %vm504_vm2, %v479_v19, %v459_v21 }
  0xad   : > { %v1297_v23 = vcombine.low %v506_v22, %v508_v20 }
  0xaf   : > { %v465_v27 = vpop.permute.xlu1 %464  ;;  %1348 = vmatprep.mubr.msk.bf16.mxu1 %vm745_vm3, %v1297_v23  ;;  %v463_v62 = vpop.permute.xlu0 %462 }
  0xb0   : > { %v512_v28 = vsel %vm504_vm2, %v488_v24, %v465_v27  ;;  %v510_v0 = vsel %vm504_vm2, %v485_v44, %v463_v62 }
  0xb1   : > { %v1298_v29 = vcombine.low %v510_v0, %v512_v28  ;;  %v1308_v31 = vcombine.low %v508_v20, %v510_v0 }
  0xb3   : > { %v467_v32 = vpop.permute.xlu1 %466  ;;  %1349 = vmatmul.mubr.msk.bf16.vlgmr.msra.gmra.mxu1 %vm745_vm3, %v1298_v29  ;;  %1358 = vmatprep.mubr.msk.bf16.mxu0 %vm745_vm3, %v1308_v31  ;;  %v341_v33 = vpop.permute.xlu0 %340 }
  0xb4   : > { %v491_v8 = vsel %vm476_vm1, %v1593_v18, %v341_v33 }
  0xb5   : > { %v514_v11 = vsel %vm504_vm2, %v491_v8, %v467_v32 }
  0xb6   : > { %v1309_v34 = vcombine.low %v512_v28, %v514_v11 }
  0xb7   : > { %v345_v35 = vpop.permute.xlu1 %344  ;;  %v343_v37 = vpop.permute.xlu0 %342 }
  0xb8   : > { %1359 = vmatmul.mubr.msk.bf16.vlgmr.msra.gmra.mxu0 %vm745_vm3, %v1309_v34  ;;  %v494_v38 = vsel %vm476_vm1, %v1626_v48, %v343_v37  ;;  %v497_v18 = vsel %vm476_vm1, %v1637_v57, %v345_v35 }
  0xbb   : > { %v469_v39 = vpop.permute.xlu1 %468  ;;  %v347_v42 = vpop.permute.xlu0 %346 }
  0xbc   : > { %v516_v41 = vsel %vm504_vm2, %v494_v38, %v469_v39  ;;  %v500_v45 = vsel %vm476_vm1, %v1633_v55, %v347_v42 }
  0xbd   : > { %v1299_v43 = vcombine.low %v514_v11, %v516_v41 }
  0xbf   : > { %v473_v46 = vpop.permute.xlu1 %472  ;;  %1352 = vmatprep.mubr.msk.bf16.mxu1 %vm745_vm3, %v1299_v43  ;;  %v471_v49 = vpop.permute.xlu0 %470 }
  0xc0   : > { %v520_v47 = vsel %vm504_vm2, %v500_v45, %v473_v46  ;;  %v518_v50 = vsel %vm504_vm2, %v497_v18, %v471_v49 }
  0xc1   : > { %v1300_v48 = vcombine.low %v518_v50, %v520_v47  ;;  %v1310_v51 = vcombine.low %v516_v41, %v518_v50 }
  0xc3   : > { %v475_v52 = vpop.permute.xlu1 %474  ;;  %1353 = vmatmul.mubr.msk.bf16.gmra.mxu1 %vm745_vm3, %v1300_v48  ;;  %1362 = vmatprep.mubr.msk.bf16.mxu0 %vm745_vm3, %v1310_v51  ;;  %v349_v53 = vpop.permute.xlu0 %348 }
  0xc4   : > { %v503_v55 = vsel %vm476_vm1, %v1646_v2, %v349_v53  ;;  %v1317_v2 = vld [vmem:[%s1765_s2] ss:$0 sm:$0xff] }
  0xc5   : > { %v522_v5 = vsel %vm504_vm2, %v503_v55, %v475_v52 }
  0xc6   : > { %v1311_v54 = vcombine.low %v520_v47, %v522_v5 }
  0xc8   : > { %1363 = vmatmul.mubr.msk.bf16.gmra.mxu0 %vm745_vm3, %v1311_v54 }
 0x157   : > { %v1344_v57 = vpop.f32.mrf.mxu1 }
 0x159   : > { %v812_v7 = vpop.f32.mrf.mxu1 }
 0x15b   : > { %v1345_v58 = vpop.f32.mrf.mxu1 }
 0x15d   : > { %v815_v10 = vpop.f32.mrf.mxu1 }
 0x163   : > { %v1340_v56 = vpop.f32.mrf.mxu0 }
 0x165   : > { %v796_v59 = vpop.f32.mrf.mxu0 }
 0x167   : > { %v1341_v60 = vpop.f32.mrf.mxu0 }
 0x169   : > { %v799_v63 = vpop.f32.mrf.mxu0 }
 0x173   : > { %v1350_v14 = vpop.f32.mrf.mxu1 }
 0x174   : > { %v910_v1 = vadd.f32 %v1350_v14, %v1340_v56 }
 0x175   : > { %v901_v61 = vpop.f32.mrf.mxu1 }
 0x176   : > { %v902_v6 = vadd.f32 %v901_v61, %v796_v59 }
 0x177   : > { %v1351_v3 = vpop.f32.mrf.mxu1 }
 0x178   : > { %v1360_v4 = vpop.f32.mrf.mxu0  ;;  %v913_v30 = vadd.f32 %v1351_v3, %v1341_v60 }
 0x179   : > { %v1028_v25 = vadd.f32 %v1360_v4, %v910_v1  ;;  %v904_v9 = vpop.f32.mrf.mxu1 }
 0x17a   : > { %v995_v26 = vpop.f32.mrf.mxu0  ;;  %v905_v36 = vadd.f32 %v904_v9, %v799_v63 }
 0x17b   : > { %v1043_v12 = vadd.f32 %v1317_v2, %v1028_v25  ;;  %v1026_v13 = vadd.f32 %v995_v26, %v902_v6 }
 0x17c   : > { %v1361_v15 = vpop.f32.mrf.mxu0 }
 0x17d   : > { %v1051_v16 = vmax.f32 %v1043_v12, 0.0  ;;  %v1041_v17 = vadd.f32 %v1317_v2, %v1026_v13  ;;  %v1029_v40 = vadd.f32 %v1361_v15, %v913_v30 }
 0x17e   : > { %v998_v19 = vpop.f32.mrf.mxu0 }
 0x17f   : > { %v1059_v20 = vpack.c.bf16 %v1051_v16, %v1051_v16  ;;  %v1049_v21 = vmax.f32 %v1041_v17, 0.0  ;;  %v1044_v22 = vadd.f32 %v1317_v2, %v1029_v40  ;;  %v1027_v23 = vadd.f32 %v998_v19, %v905_v36 }
 0x181   : > { %1068 = vst.msk [vmem:[%s1736_s6 + $0x8] sm:$0xf] %vm1065_vm4, %v1059_v20  ;;  %v1057_v24 = vpack.c.bf16 %v1049_v21, %v1049_v21  ;;  %v1052_v27 = vmax.f32 %v1044_v22, 0.0  ;;  %v1042_v44 = vadd.f32 %v1317_v2, %v1027_v23 }
 0x183   : > { %1066 = vst.msk [vmem:[%s1736_s6] sm:$0xf] %vm1065_vm4, %v1057_v24  ;;  %v1060_v28 = vpack.c.bf16 %v1052_v27, %v1052_v27  ;;  %v1050_v62 = vmax.f32 %v1042_v44, 0.0  ;;  %v1354_v0 = vpop.f32.mrf.mxu1 }
 0x184   : > { %v926_v32 = vadd.f32 %v1354_v0, %v1344_v57 }
 0x185   : > { %1069 = vst.msk [vmem:[%s1736_s6 + $0xc] sm:$0xf] %vm1065_vm4, %v1060_v28  ;;  %v1058_v29 = vpack.c.bf16 %v1050_v62, %v1050_v62  ;;  %v917_v31 = vpop.f32.mrf.mxu1 }
 0x186   : > { %v918_v11 = vadd.f32 %v917_v31, %v812_v7 }
 0x187   : > { %1067 = vst.msk [vmem:[%s1736_s6 + $0x4] sm:$0xf] %vm1065_vm4, %v1058_v29  ;;  %v1355_v33 = vpop.f32.mrf.mxu1 }
 0x188   : > { %v1364_v8 = vpop.f32.mrf.mxu0  ;;  %v929_v38 = vadd.f32 %v1355_v33, %v1345_v58 }
 0x189   : > { %v1032_v34 = vadd.f32 %v1364_v8, %v926_v32  ;;  %v920_v35 = vpop.f32.mrf.mxu1 }
 0x18a   : > { %v1011_v37 = vpop.f32.mrf.mxu0  ;;  %v921_v45 = vadd.f32 %v920_v35, %v815_v10 }
 0x18b   : > { %v1047_v39 = vadd.f32 %v1317_v2, %v1032_v34  ;;  %v1030_v41 = vadd.f32 %v1011_v37, %v918_v11 }
 0x18c   : > { %v1365_v42 = vpop.f32.mrf.mxu0 }
 0x18d   : > { %v1055_v43 = vmax.f32 %v1047_v39, 0.0  ;;  %v1045_v46 = vadd.f32 %v1317_v2, %v1030_v41  ;;  %v1033_v18 = vadd.f32 %v1365_v42, %v929_v38 }
 0x18e   : > { %v1014_v47 = vpop.f32.mrf.mxu0 }
 0x18f   : > { %v1063_v49 = vpack.c.bf16 %v1055_v43, %v1055_v43  ;;  %v1053_v50 = vmax.f32 %v1045_v46, 0.0  ;;  %v1048_v48 = vadd.f32 %v1317_v2, %v1033_v18  ;;  %v1031_v51 = vadd.f32 %v1014_v47, %v921_v45 }
 0x191   : > { %1072 = vst.msk [vmem:[%s1736_s6 + $0x18] sm:$0xf] %vm1065_vm4, %v1063_v49  ;;  %v1061_v52 = vpack.c.bf16 %v1053_v50, %v1053_v50  ;;  %v1056_v53 = vmax.f32 %v1048_v48, 0.0  ;;  %v1046_v55 = vadd.f32 %v1317_v2, %v1031_v51 }
 0x193   : > { %1070 = vst.msk [vmem:[%s1736_s6 + $0x10] sm:$0xf] %vm1065_vm4, %v1061_v52  ;;  %v1064_v5 = vpack.c.bf16 %v1056_v53, %v1056_v53  ;;  %v1054_v54 = vmax.f32 %v1046_v55, 0.0 }
 0x195   : > { %1073 = vst.msk [vmem:[%s1736_s6 + $0x1c] sm:$0xf] %vm1065_vm4, %v1064_v5  ;;  %v1062_v57 = vpack.c.bf16 %v1054_v54, %v1054_v54 }
 0x197   : > { %1071 = vst.msk [vmem:[%s1736_s6 + $0x14] sm:$0xf] %vm1065_vm4, %v1062_v57 }
 0x198 PF: > { %s13_s14 = sadd.s32 1, %s1458_s14   ;;  %s1767_s12 = smov %s1454_s13 }
 0x199   : > { %p10_p5 = scmp.ge.s32.totalorder %s13_s14, 4   ;;  %s1768_s13 = smov %s1770_s15 }
 0x19b   :  { %12 = sbr.rel (!%p10_p5) target bundleno = 2 (0x2), region = 74 }

// kernel: residual_block_forward.5
= control target key start
LH: loop header
LB: loop body
LE: loop exit
PB: predicated region body
PF: predicated region fallthrough
CT: control target
= control target key end

     0   :  { %s1357_s15 = smov 0   ;;  %s1359_s16 = smov 0   ;;  %s1583_s0 = inlined_call_operand.vmem [shape: bf16[2,1,10,10,16], index: 0, kind: input, shape index: {}]   ;;  %s1584_s1 = inlined_call_operand.vmem [shape: bf16[3,48,16], index: 1, kind: input, shape index: {}]   ;;  %s1585_s2 = inlined_call_operand.vmem [shape: f32[1,16], index: 2, kind: input, shape index: {}]   ;;  %s1586_s3 = inlined_call_operand.vmem [shape: bf16[2,8,8,16], index: 3, kind: input, shape index: {}]   ;;  %s1587_s4 = inlined_call_operand.vmem [shape: bf16[2,8,8,16], index: 4, kind: output, shape index: {}]  }
   0x1   :  { %s1361_s17 = smov 0  }
   0x2 LB: > { %s33_s18 = sadd.s32 1, %s1324_s16  ;;  %p1109_p0 = scmp.ge.s32.totalorder %s1328_s17, 1  ;;  %s1328_s17 = sphi %s1361_s17, %s14_s17   ;;  %s1324_s16 = sphi %s1359_s16, %s1589_s16   ;;  %s1320_s15 = sphi %s1357_s15, %s1588_s15  }
   0x3   : > { %p35_p1 = scmp.ge.s32.totalorder %s33_s18, 2  ;;  %p224_p2 = scmp.lt.s32.totalorder %s1328_s17, 3 }
   0x5   : > { %s1591_s18 = smov (%p35_p1, %s33_s18), 0  ;;  %p225_p3 = pnand %p1109_p0, %p224_p2 }
   0x6   : > { %p276_p4 = scmp.lt.s32.totalorder (!%p225_p3), %s1320_s15, 1  ;;  %s1330_s5 = smov (!%p225_p3), 32  }
   0x7   : > { %228 = sbr.rel (%p225_p3) target bundleno = 390 (0x186), region = 36  ;;  %s1331_s10 = smov (!%p225_p3), 16  }
   0xc   : > { %s1593_s15 = smov (!%p276_p4, %s1320_s15), 1  ;;  %v1297_v0 = vld [vmem:[%s1584_s1 + $0x28] sm:$0xff]   ;;  %v1298_v1 = vld [vmem:[%s1584_s1 + $0x10] sm:$0xff]   ;;  %v1299_v17 = vld [vmem:[%s1584_s1 + $0x20] sm:$0xff]   ;;  %vm509_vm0 = vcmask 130048   ;;  %vm540_vm1 = vcmask 261120  }
   0xd   : > { %s1260_s19 = smul.u32 80, %s1593_s15  ;;  %1212 = vmatprep.subr.bf16.mxu0 %v1297_v0  ;;  %1226 = vmatprep.subr.bf16.mxu1 %v1298_v1  ;;  %v1300_v20 = vld [vmem:[%s1584_s1 + $0x8] sm:$0xff]   ;;  %v1301_v35 = vld [vmem:[%s1584_s1 + $0x18] sm:$0xff]   ;;  %v1302_v40 = vld [vmem:[%s1584_s1] sm:$0xff]   ;;  %vm612_vm2 = vcmask 392192   ;;  %s1170_s21 = sshll.u32 %s1593_s15, 5 }
   0xe   : > { %1213 = vmatpush3.bf16.msra.mxu0 %v1297_v0  ;;  %1227 = vmatpush3.bf16.msra.mxu1 %v1298_v1  ;;  %v1466_v62 = vld [vmem:[%s1584_s1 + $0x40] sm:$0xff]   ;;  %s299_s24 = scalar_lea.vmem %s1586_s3, %s1170_s21  ;;  %vm950_vm3 = vcmask 125952   ;;  %s1556_s29 = scalar_lea.vmem %s1587_s4, %s1170_s21 }
   0xf   : > { %s1381_s22 = scalar_lea.vmem %s1583_s0, %s1260_s19  ;;  %1214 = vmatprep.subr.bf16.mxu0 %v1299_v17  ;;  %1228 = vmatprep.subr.bf16.mxu1 %v1300_v20 }
  0x10   : > { %v1390_v2 = vld [vmem:[%s1381_s22 + $0x8] sm:$0xf]  ;;  %v322_v3 = vld [vmem:[%s1381_s22 + $0xc] sm:$0x1]  ;;  %v1394_v4 = vld [vmem:[%s1381_s22] sm:$0xf] }
  0x11   : > { %v1397_v5 = vcombine.low %v1390_v2, %v322_v3  ;;  %v320_v6 = vld [vmem:[%s1381_s22 + $0x4] sm:$0x1]  ;;  %v1401_v7 = vld [vmem:[%s1381_s22 + $0x18] sm:$0xf]  ;;  %v326_v8 = vld [vmem:[%s1381_s22 + $0x1c] sm:$0x1] }
  0x12   : > { %v1115_v9 = vcombine.low %v1394_v4, %v320_v6  ;;  %v1406_v10 = vcombine.low %v1401_v7, %v326_v8  ;;  %v1409_v11 = vld [vmem:[%s1381_s22 + $0x10] sm:$0xf]  ;;  %v324_v12 = vld [vmem:[%s1381_s22 + $0x14] sm:$0x1]  ;;  %v1413_v13 = vld [vmem:[%s1381_s22 + $0x20] sm:$0xf]  ;;  %1215 = vmatpush3.bf16.msra.mxu0 %v1299_v17  ;;  %1229 = vmatpush3.bf16.msra.mxu1 %v1300_v20 }
  0x13   : > { %v480_v14 = vrot.slane %v1397_v5, 1  ;;  %v1117_v15 = vcombine.low %v1409_v11, %v324_v12  ;;  %v328_v16 = vld [vmem:[%s1381_s22 + $0x24] sm:$0x1]  ;;  %v399_v24 = vshll.u32 %v1397_v5, 16  ;;  %v1430_v27 = vld [vmem:[%s1381_s22 + $0x30] sm:$0xf]  ;;  %1216 = vmatprep.subr.bf16.mxu0 %v1301_v35  ;;  %1230 = vmatprep.subr.bf16.mxu1 %v1302_v40 }
  0x14   : > { %v479_v18 = vrot.slane %v1115_v9, 1  ;;  %v1119_v19 = vcombine.low %v1413_v13, %v328_v16  ;;  %v482_v21 = vrot.slane %v1406_v10, 1  ;;  %v390_v22 = vshrl.u32 %v1115_v9, 16  ;;  %v1433_v28 = vld [vmem:[%s1381_s22 + $0x28] sm:$0xf] }
  0x15   : > { %491 = vrot.lane.b32.xlu0 %v480_v14, %s1330_s5  ;;  %v392_v23 = vshll.u32 %v1115_v9, 16  ;;  %v481_v25 = vrot.slane %v1117_v15, 1  ;;  %v406_v26 = vshll.u32 %v1117_v15, 16  ;;  %v332_v30 = vld [vmem:[%s1381_s22 + $0x34] sm:$0x1]  ;;  %v404_v33 = vshrl.u32 %v1117_v15, 16 }
  0x16   : > { %489 = vrot.lane.b32.xlu1 %v479_v18, %s1330_s5  ;;  %v330_v31 = vld [vmem:[%s1381_s22 + $0x2c] sm:$0x1]  ;;  %v483_v32 = vrot.slane %v1119_v19, 1  ;;  %v397_v34 = vshrl.u32 %v1397_v5, 16  ;;  %v401_v37 = vrot.slane %v399_v24, 1  ;;  %v420_v38 = vshll.u32 %v1119_v19, 16  ;;  %1217 = vmatpush3.bf16.msra.mxu0 %v1301_v35 }
  0x17   : > { %v394_v29 = vrot.slane %v392_v23, 1  ;;  %v1120_v39 = vcombine.low %v1433_v28, %v330_v31  ;;  %v408_v41 = vrot.slane %v406_v26, 1  ;;  %v413_v42 = vshll.u32 %v1406_v10, 16  ;;  %v1450_v44 = vld [vmem:[%s1381_s22 + $0x38] sm:$0xf]  ;;  %1231 = vmatpush3.bf16.msra.mxu1 %v1302_v40  ;;  %1240 = vmatprep.subr.bf16.mxu0 %v1466_v62 }
  0x18   : > { %v1121_v43 = vcombine.low %v1430_v27, %v332_v30  ;;  %v334_v45 = vld [vmem:[%s1381_s22 + $0x3c] sm:$0x1]  ;;  %v1454_v46 = vld [vmem:[%s1381_s22 + $0x40] sm:$0xf]  ;;  %v336_v47 = vld [vmem:[%s1381_s22 + $0x44] sm:$0x1]  ;;  %v402_v50 = vor.u32 %v401_v37, %v397_v34  ;;  %1254 = vmatprep.subr.bf16.mxu1 %v1466_v62 }
  0x19   : > { %495 = vrot.lane.b32.xlu0 %v482_v21, %s1330_s5  ;;  %v395_v36 = vor.u32 %v394_v29, %v390_v22  ;;  %v411_v48 = vshrl.u32 %v1406_v10, 16  ;;  %v418_v49 = vshrl.u32 %v1119_v19, 16  ;;  %v422_v51 = vrot.slane %v420_v38, 1  ;;  %v1474_v14 = vld [vmem:[%s1381_s22 + $0x48] sm:$0xf] }
  0x1a   : > { %493 = vrot.lane.b32.xlu1 %v481_v25, %s1330_s5  ;;  %v427_v52 = vshll.u32 %v1120_v39, 16  ;;  %v1122_v53 = vcombine.low %v1450_v44, %v334_v45  ;;  %v409_v54 = vor.u32 %v408_v41, %v404_v33  ;;  %v415_v55 = vrot.slane %v413_v42, 1  ;;  %v338_v15 = vld [vmem:[%s1381_s22 + $0x4c] sm:$0x1] }
  0x1b   : > { %v434_v56 = vshll.u32 %v1121_v43, 16  ;;  %v1123_v57 = vcombine.low %v1454_v46, %v336_v47  ;;  %v423_v58 = vor.u32 %v422_v51, %v418_v49  ;;  %v425_v59 = vshrl.u32 %v1120_v39, 16 }
  0x1c   : > { %v429_v60 = vrot.slane %v427_v52, 1  ;;  %v441_v61 = vshll.u32 %v1122_v53, 16  ;;  %v416_v63 = vor.u32 %v415_v55, %v411_v48  ;;  %v432_v0 = vshrl.u32 %v1121_v43, 16 }
  0x1d   : > { %459 = vrot.lane.b32.xlu0 %v395_v36, %s1331_s10  ;;  %v436_v1 = vrot.slane %v434_v56, 1  ;;  %v448_v3 = vshll.u32 %v1123_v57, 16  ;;  %v439_v6 = vshrl.u32 %v1122_v53, 16  ;;  %v446_v10 = vshrl.u32 %v1123_v57, 16 }
  0x1e   : > { %497 = vrot.lane.b32.xlu1 %v483_v32, %s1330_s5  ;;  %v430_v5 = vor.u32 %v429_v60, %v425_v59  ;;  %v443_v8 = vrot.slane %v441_v61, 1  ;;  %v1124_v17 = vcombine.low %v1474_v14, %v338_v15  ;;  %v484_v19 = vrot.slane %v1120_v39, 1 }
  0x1f   : > { %v437_v9 = vor.u32 %v436_v1, %v432_v0  ;;  %v450_v12 = vrot.slane %v448_v3, 1  ;;  %v485_v21 = vrot.slane %v1121_v43, 1  ;;  %v486_v22 = vrot.slane %v1122_v53, 1 }
  0x20   : > { %v444_v16 = vor.u32 %v443_v8, %v439_v6  ;;  %v455_v20 = vshll.u32 %v1124_v17, 16  ;;  %v453_v23 = vshrl.u32 %v1124_v17, 16  ;;  %v487_v25 = vrot.slane %v1123_v57, 1 }
  0x21   : > { %461 = vrot.lane.b32.xlu0 %v402_v50, %s1331_s10  ;;  %v451_v18 = vor.u32 %v450_v12, %v446_v10  ;;  %v488_v29 = vrot.slane %v1124_v17, 1 }
  0x22   : > { %463 = vrot.lane.b32.xlu1 %v409_v54, %s1331_s10  ;;  %v457_v24 = vrot.slane %v455_v20, 1  ;;  %v1304_v54 = vld [vmem:[%s1584_s1 + $0x38] sm:$0xff]  }
  0x24   : > { %v458_v26 = vor.u32 %v457_v24, %v453_v23 }
  0x25   : > { %467 = vrot.lane.b32.xlu0 %v423_v58, %s1331_s10 }
  0x26   : > { %465 = vrot.lane.b32.xlu1 %v416_v63, %s1331_s10 }
  0x29   : > { %469 = vrot.lane.b32.xlu0 %v430_v5, %s1331_s10 }
  0x2a   : > { %471 = vrot.lane.b32.xlu1 %v437_v9, %s1331_s10 }
  0x2d   : > { %473 = vrot.lane.b32.xlu0 %v444_v16, %s1331_s10 }
  0x2e   : > { %475 = vrot.lane.b32.xlu1 %v451_v18, %s1331_s10 }
  0x31   : > { %499 = vrot.lane.b32.xlu0 %v484_v19, %s1330_s5 }
  0x32   : > { %501 = vrot.lane.b32.xlu1 %v485_v21, %s1330_s5 }
  0x35   : > { %503 = vrot.lane.b32.xlu0 %v486_v22, %s1330_s5 }
  0x36   : > { %505 = vrot.lane.b32.xlu1 %v487_v25, %s1330_s5 }
  0x39   : > { %477 = vrot.lane.b32.xlu0 %v458_v26, %s1331_s10 }
  0x3a   : > { %507 = vrot.lane.b32.xlu1 %v488_v29, %s1330_s5 }
  0x87   : > { %v492_v30 = vpop.permute.xlu0 %491 }
  0x88   : > { %v490_v31 = vpop.permute.xlu1 %489 }
  0x8b   : > { %v496_v32 = vpop.permute.xlu0 %495 }
  0x8c   : > { %v494_v33 = vpop.permute.xlu1 %493 }
  0x8f   : > { %v460_v34 = vpop.permute.xlu0 %459 }
  0x90   : > { %v498_v35 = vpop.permute.xlu1 %497  ;;  %v512_v36 = vsel %vm509_vm0, %v1394_v4, %v460_v34 }
  0x91   : > { %v542_v42 = vsel %vm540_vm1, %v512_v36, %v490_v31  ;;  %v1188_v31 = vld [vmem:[%s299_s24 + $0x8] sm:$0xff]  }
  0x93   : > { %v462_v37 = vpop.permute.xlu0 %461 }
  0x94   : > { %v464_v38 = vpop.permute.xlu1 %463  ;;  %v515_v39 = vsel %vm509_vm0, %v1390_v2, %v462_v37 }
  0x95   : > { %v518_v40 = vsel %vm509_vm0, %v1409_v11, %v464_v38  ;;  %v544_v41 = vsel %vm540_vm1, %v515_v39, %v492_v30  ;;  %v1167_v39 = vld [vmem:[%s1585_s2] ss:$0 sm:$0xff] }
  0x96   : > { %v546_v43 = vsel %vm540_vm1, %v518_v40, %v494_v33  ;;  %v1142_v45 = vcombine.low %v542_v42, %v544_v41  ;;  %v1544_v33 = vld [vmem:[%s299_s24] sm:$0xff]   ;;  %v1178_v40 = vunpack.c.l.bf16 %v1188_v31 }
  0x97   : > { %v468_v47 = vpop.permute.xlu0 %467  ;;  %v1131_v48 = vcombine.low %v544_v41, %v546_v43 }
  0x98   : > { %v466_v4 = vpop.permute.xlu1 %465  ;;  %v524_v49 = vsel %vm509_vm0, %v1413_v13, %v468_v47  ;;  %1232 = vmatprep.mubr.msk.bf16.mxu1 %vm612_vm2, %v1142_v45  ;;  %v1305_v13 = vld [vmem:[%s1584_s1 + $0x30] sm:$0xff]  }
  0x99   : > { %v521_v2 = vsel %vm509_vm0, %v1401_v7, %v466_v4  ;;  %v550_v11 = vsel %vm540_vm1, %v524_v49, %v498_v35  ;;  %1218 = vmatprep.mubr.msk.bf16.mxu0 %vm612_vm2, %v1131_v48  ;;  %v1189_v35 = vld [vmem:[%s299_s24 + $0x10] sm:$0xff]   ;;  %v1179_v49 = vunpack.c.h.bf16 %v1188_v31 }
  0x9a   : > { %v548_v50 = vsel %vm540_vm1, %v521_v2, %v496_v32  ;;  %v1190_v32 = vld [vmem:[%s299_s24 + $0x18] sm:$0xff]   ;;  %v1182_v4 = vunpack.c.l.bf16 %v1189_v35 }
  0x9b   : > { %v1132_v51 = vcombine.low %v548_v50, %v550_v11  ;;  %v1143_v52 = vcombine.low %v546_v43, %v548_v50  ;;  %v470_v53 = vpop.permute.xlu0 %469  ;;  %v1186_v42 = vunpack.c.l.bf16 %v1190_v32  ;;  %v1174_v43 = vunpack.c.l.bf16 %v1544_v33 }
  0x9c   : > { %v472_v55 = vpop.permute.xlu1 %471  ;;  %v527_v57 = vsel %vm509_vm0, %v1433_v28, %v470_v53 }
  0x9d   : > { %1219 = vmatmul.mubr.msk.bf16.vlgmr.msra.gmra.mxu0 %vm612_vm2, %v1132_v51  ;;  %1233 = vmatmul.mubr.msk.bf16.vlgmr.msra.gmra.mxu1 %vm612_vm2, %v1143_v52  ;;  %v530_v59 = vsel %vm509_vm0, %v1430_v27, %v472_v55  ;;  %v1187_v51 = vunpack.c.h.bf16 %v1190_v32 }
  0x9e   : > { %1241 = vmatpush3.bf16.msra.mxu0 %v1466_v62  ;;  %1257 = vmatpush3.bf16.msra.mxu1 %v1466_v62 }
  0x9f   : > { %v474_v7 = vpop.permute.xlu0 %473  ;;  %1242 = vmatprep.subr.bf16.mxu0 %v1304_v54  ;;  %1255 = vmatprep.subr.bf16.mxu1 %v1304_v54 }
  0xa0   : > { %v476_v56 = vpop.permute.xlu1 %475  ;;  %v533_v1 = vsel %vm509_vm0, %v1450_v44, %v474_v7  ;;  %v1175_v7 = vunpack.c.h.bf16 %v1544_v33 }
  0xa1   : > { %v536_v3 = vsel %vm509_vm0, %v1454_v46, %v476_v56 }
  0xa2   : > { %1243 = vmatpush3.bf16.msra.mxu0 %v1304_v54  ;;  %1258 = vmatpush3.bf16.msra.mxu1 %v1304_v54 }
  0xa3   : > { %v500_v58 = vpop.permute.xlu0 %499  ;;  %1244 = vmatprep.subr.bf16.mxu0 %v1305_v13  ;;  %1256 = vmatprep.subr.bf16.mxu1 %v1305_v13 }
  0xa4   : > { %v502_v60 = vpop.permute.xlu1 %501  ;;  %v552_v61 = vsel %vm540_vm1, %v527_v57, %v500_v58 }
  0xa5   : > { %v554_v62 = vsel %vm540_vm1, %v530_v59, %v502_v60  ;;  %v1144_v63 = vcombine.low %v550_v11, %v552_v61  ;;  %v1183_v59 = vunpack.c.h.bf16 %v1189_v35 }
  0xa6   : > { %v1133_v0 = vcombine.low %v552_v61, %v554_v62  ;;  %1245 = vmatpush3.bf16.msra.mxu0 %v1305_v13  ;;  %1259 = vmatpush3.bf16.msra.mxu1 %v1305_v13 }
  0xa7   : > { %1236 = vmatprep.mubr.msk.bf16.mxu1 %vm612_vm2, %v1144_v63  ;;  %v504_v28 = vpop.permute.xlu0 %503 }
  0xa8   : > { %v506_v5 = vpop.permute.xlu1 %505  ;;  %1222 = vmatprep.mubr.msk.bf16.mxu0 %vm612_vm2, %v1133_v0  ;;  %v556_v27 = vsel %vm540_vm1, %v533_v1, %v504_v28 }
  0xa9   : > { %v558_v6 = vsel %vm540_vm1, %v536_v3, %v506_v5  ;;  %v1145_v8 = vcombine.low %v554_v62, %v556_v27 }
  0xaa   : > { %v1134_v9 = vcombine.low %v556_v27, %v558_v6 }
  0xab   : > { %1237 = vmatmul.mubr.msk.bf16.gmra.mxu1 %vm612_vm2, %v1145_v8  ;;  %v478_v10 = vpop.permute.xlu0 %477 }
  0xac   : > { %1223 = vmatmul.mubr.msk.bf16.gmra.mxu0 %vm612_vm2, %v1134_v9  ;;  %v539_v44 = vsel %vm509_vm0, %v1474_v14, %v478_v10  ;;  %v508_v12 = vpop.permute.xlu1 %507  ;;  %1250 = vmatprep.mubr.msk.bf16.mxu1 %vm612_vm2, %v1145_v8 }
  0xad   : > { %1246 = vmatprep.mubr.msk.bf16.mxu0 %vm612_vm2, %v1143_v52  ;;  %v560_v46 = vsel %vm540_vm1, %v539_v44, %v508_v12 }
  0xae   : > { %v1159_v15 = vcombine.low %v558_v6, %v560_v46 }
  0xb3   : > { %1251 = vmatmul.mubr.msk.bf16.vlgmr.msra.gmra.mxu1 %vm612_vm2, %v1159_v15 }
  0xb4   : > { %1247 = vmatmul.mubr.msk.bf16.vlgmr.msra.gmra.mxu0 %vm612_vm2, %v1144_v63 }
 0x15d   : > { %v1234_v16 = vpop.f32.mrf.mxu1  ;;  %v1220_v17 = vpop.f32.mrf.mxu0 }
 0x15e   : > { %v769_v38 = vadd.f32 %v1234_v16, %v1220_v17 }
 0x15f   : > { %v760_v18 = vpop.f32.mrf.mxu1  ;;  %v659_v19 = vpop.f32.mrf.mxu0 }
 0x160   : > { %v761_v2 = vadd.f32 %v760_v18, %v659_v19 }
 0x161   : > { %v1235_v20 = vpop.f32.mrf.mxu1  ;;  %v1221_v14 = vpop.f32.mrf.mxu0 }
 0x162   : > { %v772_v13 = vadd.f32 %v1235_v20, %v1221_v14 }
 0x163   : > { %v763_v21 = vpop.f32.mrf.mxu1  ;;  %v662_v22 = vpop.f32.mrf.mxu0 }
 0x164   : > { %v764_v1 = vadd.f32 %v763_v21, %v662_v22 }
 0x16b   : > { %v1238_v23 = vpop.f32.mrf.mxu1 }
 0x16c   : > { %v1224_v24 = vpop.f32.mrf.mxu0 }
 0x16d   : > { %v776_v25 = vpop.f32.mrf.mxu1  ;;  %v785_v36 = vadd.f32 %v1238_v23, %v1224_v24 }
 0x16e   : > { %v675_v26 = vpop.f32.mrf.mxu0 }
 0x16f   : > { %v1239_v29 = vpop.f32.mrf.mxu1  ;;  %v777_v45 = vadd.f32 %v776_v25, %v675_v26 }
 0x170   : > { %v1225_v30 = vpop.f32.mrf.mxu0 }
 0x171   : > { %v779_v34 = vpop.f32.mrf.mxu1  ;;  %v788_v52 = vadd.f32 %v1239_v29, %v1225_v30 }
 0x172   : > { %v678_v37 = vpop.f32.mrf.mxu0 }
 0x173   : > { %v1252_v41 = vpop.f32.mrf.mxu1  ;;  %v780_v60 = vadd.f32 %v779_v34, %v678_v37 }
 0x174   : > { %v1248_v47 = vpop.f32.mrf.mxu0  ;;  %v893_v48 = vadd.f32 %v1252_v41, %v785_v36 }
 0x175   : > { %v889_v11 = vadd.f32 %v1248_v47, %v769_v38  ;;  %v872_v50 = vpop.f32.mrf.mxu1 }
 0x176   : > { %v908_v53 = vadd.f32 %v1167_v39, %v893_v48  ;;  %v856_v54 = vpop.f32.mrf.mxu0  ;;  %v891_v55 = vadd.f32 %v872_v50, %v777_v45 }
 0x177   : > { %v904_v56 = vadd.f32 %v1167_v39, %v889_v11  ;;  %v887_v57 = vadd.f32 %v856_v54, %v761_v2  ;;  %v1253_v58 = vpop.f32.mrf.mxu1 }
 0x178   : > { %v932_v61 = vadd.f32 %v1186_v42, %v908_v53  ;;  %v906_v62 = vadd.f32 %v1167_v39, %v891_v55  ;;  %v1249_v63 = vpop.f32.mrf.mxu0  ;;  %v894_v0 = vadd.f32 %v1253_v58, %v788_v52 }
 0x179   : > { %v928_v28 = vadd.f32 %v1178_v40, %v904_v56  ;;  %v902_v3 = vadd.f32 %v1167_v39, %v887_v57  ;;  %v890_v5 = vadd.f32 %v1249_v63, %v772_v13  ;;  %v875_v27 = vpop.f32.mrf.mxu1 }
 0x17a   : > { %v940_v6 = vmax.f32 %v932_v61, 0.0  ;;  %v930_v8 = vadd.f32 %v1182_v4, %v906_v62  ;;  %v909_v9 = vadd.f32 %v1167_v39, %v894_v0  ;;  %v859_v10 = vpop.f32.mrf.mxu0  ;;  %v892_v44 = vadd.f32 %v875_v27, %v780_v60 }
 0x17b   : > { %v936_v12 = vmax.f32 %v928_v28, 0.0  ;;  %v926_v46 = vadd.f32 %v1174_v43, %v902_v3  ;;  %v905_v15 = vadd.f32 %v1167_v39, %v890_v5  ;;  %v888_v16 = vadd.f32 %v859_v10, %v764_v1 }
 0x17c   : > { %v948_v17 = vpack.c.bf16 %v940_v6, %v940_v6  ;;  %v938_v18 = vmax.f32 %v930_v8, 0.0  ;;  %v933_v19 = vadd.f32 %v1187_v51, %v909_v9  ;;  %v907_v20 = vadd.f32 %v1167_v39, %v892_v44 }
 0x17d   : > { %v944_v14 = vpack.c.bf16 %v936_v12, %v936_v12  ;;  %v934_v21 = vmax.f32 %v926_v46, 0.0  ;;  %v929_v22 = vadd.f32 %v1179_v49, %v905_v15  ;;  %v903_v23 = vadd.f32 %v1167_v39, %v888_v16 }
 0x17e   : > { %957 = vst.msk [vmem:[%s1556_s29 + $0x18] sm:$0xf] %vm950_vm3, %v948_v17  ;;  %v946_v24 = vpack.c.bf16 %v938_v18, %v938_v18  ;;  %v941_v25 = vmax.f32 %v933_v19, 0.0  ;;  %v931_v26 = vadd.f32 %v1183_v59, %v907_v20 }
 0x17f   : > { %953 = vst.msk [vmem:[%s1556_s29 + $0x8] sm:$0xf] %vm950_vm3, %v944_v14  ;;  %v942_v29 = vpack.c.bf16 %v934_v21, %v934_v21  ;;  %v937_v30 = vmax.f32 %v929_v22, 0.0  ;;  %v927_v31 = vadd.f32 %v1175_v7, %v903_v23 }
 0x180   : > { %955 = vst.msk [vmem:[%s1556_s29 + $0x10] sm:$0xf] %vm950_vm3, %v946_v24  ;;  %v949_v32 = vpack.c.bf16 %v941_v25, %v941_v25  ;;  %v939_v33 = vmax.f32 %v931_v26, 0.0 }
 0x181   : > { %951 = vst.msk [vmem:[%s1556_s29] sm:$0xf] %vm950_vm3, %v942_v29  ;;  %v945_v34 = vpack.c.bf16 %v937_v30, %v937_v30  ;;  %v935_v35 = vmax.f32 %v927_v31, 0.0 }
 0x182   : > { %958 = vst.msk [vmem:[%s1556_s29 + $0x1c] sm:$0xf] %vm950_vm3, %v949_v32  ;;  %v947_v36 = vpack.c.bf16 %v939_v33, %v939_v33 }
 0x183   : > { %954 = vst.msk [vmem:[%s1556_s29 + $0xc] sm:$0xf] %vm950_vm3, %v945_v34  ;;  %v943_v37 = vpack.c.bf16 %v935_v35, %v935_v35 }
 0x184   : > { %956 = vst.msk [vmem:[%s1556_s29 + $0x14] sm:$0xf] %vm950_vm3, %v947_v36 }
 0x185   : > { %952 = vst.msk [vmem:[%s1556_s29 + $0x4] sm:$0xf] %vm950_vm3, %v943_v37 }
 0x186 PF: > { %s14_s17 = sadd.s32 1, %s1328_s17   ;;  %s1588_s15 = smov %s1324_s16 }
 0x187   : > { %p11_p5 = scmp.ge.s32.totalorder %s14_s17, 4   ;;  %s1589_s16 = smov %s1591_s18 }
 0x189   :  { %13 = sbr.rel (!%p11_p5) target bundleno = 2 (0x2), region = 78 }

</bundles_post_ra>
